<compile_context>
chip_gen: v6e
topology: v6e:2x2x1
jax: 0.10.0
libtpu: 0.0.40
codegen_flags: <defaults>
</compile_context>

<pallas_src>
import functools

import jax
import jax.numpy as jnp
from jax.experimental import pallas as pl
from jax.experimental.pallas import tpu as pltpu


def _round_up(n, m):
    return ((n + m - 1) // m) * m


# ----------------------------------------------------------------------------
# Kernel 1: fused CNN backbone (conv3x3 -> ReLU -> GAP -> fc) per image
# ----------------------------------------------------------------------------
def _backbone_kernel(x_ref, wc_ref, bc_ref, pool_ref, wf_ref, bf_ref, o_ref,
                     *, m, w, c_out):
    """Fused conv3x3(valid) + bias + ReLU + global-avg-pool + fc, one image.

    x_ref:    (1, H*W + pad, C_in)  bf16  flattened NHWC image (zero-padded)
    wc_ref:   (9, C_in, C_out)      bf16  conv weights, k = dy*3 + dx
    bc_ref:   (1, C_out)            f32
    pool_ref: (1, Ho*W)             f32   masked mean weights: 1/(Ho*Wo) on
                                          valid columns, 0 on the W-Wo
                                          wrap-around columns of the shifted
                                          slab trick
    wf_ref:   (C_out, V)            f32
    bf_ref:   (1, V)                f32
    o_ref:    (1, 1, V)             f32   lane-dense visual embedding
    """
    x = x_ref[0]                                   # (H*W+pad, C_in) bf16
    acc = jnp.zeros((m, c_out), jnp.float32)
    # 3x3 valid conv as 9 shift-and-accumulate matmuls (f32 accumulation).
    for k in range(9):
        dy, dx = divmod(k, 3)
        off = dy * w + dx
        acc = acc + jnp.dot(x[off:off + m, :], wc_ref[k],
                            preferred_element_type=jnp.float32)
    conv = jnp.maximum(acc + bc_ref[...], 0.0)     # (m, C_out), f32 epilogue
    # Global average pool over valid spatial positions as a (1,m)x(m,C_out)
    # matmul; pool_ref already folds in the 1/(Ho*Wo) factor and the mask.
    pooled = jnp.dot(pool_ref[...], conv, preferred_element_type=jnp.float32)
    # fc projection to the lane-dense (1, visual_dim) embedding.
    y = jnp.dot(pooled, wf_ref[...], preferred_element_type=jnp.float32)
    o_ref[0] = (y + bf_ref[...]).astype(o_ref.dtype)


def pallas_cnn_backbone(image_nchw, cnn_params):
    """image_nchw (B, C_in, H, W) -> visual_emb (B, visual_dim)."""
    w_conv = cnn_params["conv_w"]     # (C_out, C_in, 3, 3), PyTorch OIHW
    b_conv = cnn_params["conv_b"]     # (C_out,)
    w_fc = cnn_params["fc_w"]         # (C_out, visual_dim)
    b_fc = cnn_params["fc_b"]         # (visual_dim,)

    B, C_in, H, W = image_nchw.shape
    C_out = w_conv.shape[0]
    V = w_fc.shape[1]
    Ho, Wo = H - 2, W - 2
    M = Ho * W                         # rows of each shifted matmul
    PAD = 8                            # keeps the dy=dx=2 shifted slice in-bounds

    # ---- XLA-side layout/weight prep (glue only, no big intermediates) -----
    # NCHW -> NHWC -> flatten spatial; bf16 MXU operands; zero-pad rows.
    x = jnp.transpose(image_nchw, (0, 2, 3, 1)).reshape(B, H * W, C_in)
    x = jnp.pad(x, ((0, 0), (0, PAD), (0, 0))).astype(jnp.bfloat16)
    # (9, C_in, C_out) weight slabs with k = dy*3 + dx ordering.
    wc = jnp.transpose(w_conv, (2, 3, 1, 0)).reshape(9, C_in, C_out)
    wc = wc.astype(jnp.bfloat16)
    bc = b_conv.reshape(1, C_out).astype(jnp.float32)
    # Pooling row: 1/(Ho*Wo) where column index c < Wo, else 0 (masks the
    # wrap-around columns produced by the shifted-slab conv).
    col = jnp.arange(M, dtype=jnp.int32) % W
    pool = jnp.where(col < Wo, 1.0 / (Ho * Wo), 0.0).reshape(1, M)
    pool = pool.astype(jnp.float32)
    wf = w_fc.astype(jnp.float32)
    bf = b_fc.reshape(1, V).astype(jnp.float32)

    kernel = functools.partial(_backbone_kernel, m=M, w=W, c_out=C_out)
    # NOTE: for large images, add a second ("arbitrary") grid axis tiling rows
    # of the flattened image and accumulate the pooled sum in a VMEM scratch
    # with pl.when init/finalize.  At H=W=16 a whole image fits trivially.
    out = pl.pallas_call(
        kernel,
        out_shape=jax.ShapeDtypeStruct((B, 1, V), jnp.float32),
        grid=(B,),
        in_specs=[
            pl.BlockSpec((1, H * W + PAD, C_in), lambda b: (b, 0, 0)),
            pl.BlockSpec((9, C_in, C_out), lambda b: (0, 0, 0)),
            pl.BlockSpec((1, C_out), lambda b: (0, 0)),
            pl.BlockSpec((1, M), lambda b: (0, 0)),
            pl.BlockSpec((C_out, V), lambda b: (0, 0)),
            pl.BlockSpec((1, V), lambda b: (0, 0)),
        ],
        out_specs=pl.BlockSpec((1, 1, V), lambda b: (b, 0, 0)),
        compiler_params=pltpu.CompilerParams(
            dimension_semantics=("parallel",),        # shard over 2 TCs on v7x
            vmem_limit_bytes=32 * 1024 * 1024),
    )(x, wc, bc, pool, wf, bf)
    return out.reshape(B, V)


# ----------------------------------------------------------------------------
# Kernel 2: label gather (scalar prefetch) + word_emb_transformer MLP
# ----------------------------------------------------------------------------
def _word_mlp_kernel(label_ref, emb_ref, w1_ref, b1_ref, w2_ref, b2_ref,
                     o_ref):
    """Linear -> ReLU -> Linear -> ReLU on the gathered word embedding.

    label_ref is the scalar-prefetch ref (consumed only by the index_maps).
    """
    del label_ref
    x = emb_ref[0]                                           # (1, S_pad) bf16
    h = jnp.dot(x, w1_ref[...], preferred_element_type=jnp.float32)
    h = jnp.maximum(h + b1_ref[...], 0.0)                    # f32 epilogue
    y = jnp.dot(h.astype(jnp.bfloat16), w2_ref[...],
                preferred_element_type=jnp.float32)
    y = jnp.maximum(y + b2_ref[...], 0.0)
    o_ref[0] = y.astype(o_ref.dtype)


def pallas_word_emb_transformer(label, word_embeddings, mlp_params):
    """label (B,) int32, word_embeddings (N, S) -> (B, V)."""
    w1, b1 = mlp_params["w1"], mlp_params["b1"]
    w2, b2 = mlp_params["w2"], mlp_params["b2"]
    N, S = word_embeddings.shape
    _, H = w1.shape
    _, V = w2.shape
    B = label.shape[0]

    # Zero-pad feature dims to 128-lane width (exact: padded rows/cols are
    # zero, padded biases are zero, so the result is unchanged).
    S_pad = _round_up(S, 128)
    H_pad = _round_up(H, 128)
    V_pad = _round_up(V, 128)

    emb = jnp.pad(word_embeddings, ((0, 0), (0, S_pad - S)))
    emb = emb.reshape(N, 1, S_pad).astype(jnp.bfloat16)
    w1p = jnp.pad(w1, ((0, S_pad - S), (0, H_pad - H))).astype(jnp.bfloat16)
    b1p = jnp.pad(b1, (0, H_pad - H)).reshape(1, H_pad).astype(jnp.float32)
    w2p = jnp.pad(w2, ((0, H_pad - H), (0, V_pad - V))).astype(jnp.bfloat16)
    b2p = jnp.pad(b2, (0, V_pad - V)).reshape(1, V_pad).astype(jnp.float32)

    out = pl.pallas_call(
        _word_mlp_kernel,
        out_shape=jax.ShapeDtypeStruct((B, 1, V_pad), jnp.float32),
        grid_spec=pltpu.PrefetchScalarGridSpec(
            num_scalar_prefetch=1,                    # label -> SMEM
            grid=(B,),
            in_specs=[
                # data-dependent gather: row label[b] of the embedding table
                pl.BlockSpec((1, 1, S_pad), lambda b, lbl: (lbl[b], 0, 0)),
                pl.BlockSpec((S_pad, H_pad), lambda b, lbl: (0, 0)),
                pl.BlockSpec((1, H_pad), lambda b, lbl: (0, 0)),
                pl.BlockSpec((H_pad, V_pad), lambda b, lbl: (0, 0)),
                pl.BlockSpec((1, V_pad), lambda b, lbl: (0, 0)),
            ],
            out_specs=pl.BlockSpec((1, 1, V_pad), lambda b, lbl: (b, 0, 0)),
        ),
        compiler_params=pltpu.CompilerParams(
            dimension_semantics=("parallel",),
            vmem_limit_bytes=32 * 1024 * 1024),
    )(label.astype(jnp.int32), emb, w1p, b1p, w2p, b2p)
    return out.reshape(B, V_pad)[:, :V]


# ----------------------------------------------------------------------------
# DEMORdinary forward
# ----------------------------------------------------------------------------
def dem_ordinary_forward(image, label, word_embeddings, params):
    """Matches DEMORdinary.forward: returns (word_embed, visual_emb)."""
    visual_emb = pallas_cnn_backbone(image, params["cnn"])
    word_embed = pallas_word_emb_transformer(label, word_embeddings,
                                             params["mlp"])
    return word_embed, visual_emb


# ----------------------------------------------------------------------------
# Deterministic parameters + pure-JAX reference (for a sanity check)
# ----------------------------------------------------------------------------
def make_params(key, *, c_in, c_out, visual_dim, semantic_dim, hidden_dim):
    ks = jax.random.split(key, 8)
    scale = 0.05
    return {
        "cnn": {
            "conv_w": scale * jax.random.normal(ks[0], (c_out, c_in, 3, 3),
                                                jnp.float32),
            "conv_b": scale * jax.random.normal(ks[1], (c_out,), jnp.float32),
            "fc_w": scale * jax.random.normal(ks[2], (c_out, visual_dim),
                                              jnp.float32),
            "fc_b": scale * jax.random.normal(ks[3], (visual_dim,),
                                              jnp.float32),
        },
        "mlp": {
            "w1": scale * jax.random.normal(ks[4], (semantic_dim, hidden_dim),
                                            jnp.float32),
            "b1": scale * jax.random.normal(ks[5], (hidden_dim,), jnp.float32),
            "w2": scale * jax.random.normal(ks[6], (hidden_dim, visual_dim),
                                            jnp.float32),
            "b2": scale * jax.random.normal(ks[7], (visual_dim,), jnp.float32),
        },
    }


def _reference_forward(image, label, word_embeddings, params):
    """Pure-JAX f32 reference implementing the same forward semantics."""
    cnn, mlp = params["cnn"], params["mlp"]
    B, C_in, H, W = image.shape
    C_out = cnn["conv_w"].shape[0]
    Ho, Wo = H - 2, W - 2
    x = jnp.transpose(image, (0, 2, 3, 1))
    patches = jnp.concatenate(
        [x[:, dy:dy + Ho, dx:dx + Wo, :] for dy in range(3) for dx in range(3)],
        axis=-1).reshape(B * Ho * Wo, 9 * C_in)
    w_mat = jnp.transpose(cnn["conv_w"], (2, 3, 1, 0)).reshape(9 * C_in, C_out)
    conv = jax.nn.relu(patches @ w_mat + cnn["conv_b"])
    pooled = conv.reshape(B, Ho * Wo, C_out).mean(axis=1)
    visual = pooled @ cnn["fc_w"] + cnn["fc_b"]
    sel = word_embeddings[label]
    h = jax.nn.relu(sel @ mlp["w1"] + mlp["b1"])
    y = jax.nn.relu(h @ mlp["w2"] + mlp["b2"])
    return y, visual


if __name__ == "__main__":
    # Small shapes consistent with the module's forward signature.
    B, C_IN, HW = 2, 4, 16
    C_OUT = 8
    VISUAL_DIM = 128
    SEMANTIC_DIM = 32
    HIDDEN_DIM = 64
    N_CLASS = 5

    key = jax.random.PRNGKey(0)
    k_img, k_emb, k_params = jax.random.split(key, 3)

    image = jax.random.normal(k_img, (B, C_IN, HW, HW), jnp.float32)  # NCHW
    label = jnp.array([0, 1], dtype=jnp.int32)                        # (B,)
    word_embeddings = jax.random.normal(k_emb, (N_CLASS, SEMANTIC_DIM),
                                        jnp.float32)

    params = make_params(k_params, c_in=C_IN, c_out=C_OUT,
                         visual_dim=VISUAL_DIM, semantic_dim=SEMANTIC_DIM,
                         hidden_dim=HIDDEN_DIM)

    fwd = jax.jit(dem_ordinary_forward)
    word_embed, visual_emb = fwd(image, label, word_embeddings, params)
    jax.block_until_ready((word_embed, visual_emb))

    assert word_embed.shape == (B, VISUAL_DIM)
    assert visual_emb.shape == (B, VISUAL_DIM)

    # Numerical sanity check vs. pure-JAX f32 reference (bf16 MXU operands in
    # the kernels -> loose tolerance).
    ref_word, ref_visual = _reference_forward(image, label, word_embeddings,
                                              params)
    assert bool(jnp.allclose(visual_emb, ref_visual, atol=5e-2, rtol=5e-2))
    assert bool(jnp.allclose(word_embed, ref_word, atol=5e-2, rtol=5e-2))

    print("KERNEL_OK")
</pallas_src>

<mosaic_0001>
module attributes {stable_mosaic.version = 11 : i64} {
  func.func @_backbone_kernel(%arg0: i32, %arg1: memref<1x264x4xbf16, #tpu.memory_space<vmem>>, %arg2: memref<9x4x8xbf16, #tpu.memory_space<vmem>>, %arg3: memref<1x8xf32, #tpu.memory_space<vmem>>, %arg4: memref<1x224xf32, #tpu.memory_space<vmem>>, %arg5: memref<8x128xf32, #tpu.memory_space<vmem>>, %arg6: memref<1x128xf32, #tpu.memory_space<vmem>>, %arg7: memref<1x1x128xf32, #tpu.memory_space<vmem>>) attributes {dimension_semantics = [#tpu.dimension_semantics<parallel>], iteration_bounds = array<i64: 2>, scalar_prefetch = 0 : i64, scratch_operands = 0 : i64, tpu.core_type = #tpu.core_type<tc>, window_params = [{transform_indices = @transform_0, window_bounds = array<i64: 1, 264, 4>}, {pipeline_mode = #tpu.pipeline_mode<synchronous>, transform_indices = @transform_1, window_bounds = array<i64: 9, 4, 8>}, {pipeline_mode = #tpu.pipeline_mode<synchronous>, transform_indices = @transform_2, window_bounds = array<i64: 1, 8>}, {pipeline_mode = #tpu.pipeline_mode<synchronous>, transform_indices = @transform_3, window_bounds = array<i64: 1, 224>}, {pipeline_mode = #tpu.pipeline_mode<synchronous>, transform_indices = @transform_4, window_bounds = array<i64: 8, 128>}, {pipeline_mode = #tpu.pipeline_mode<synchronous>, transform_indices = @transform_5, window_bounds = array<i64: 1, 128>}, {transform_indices = @transform_6, window_bounds = array<i64: 1, 1, 128>}]} {
    %c0 = arith.constant 0 : index
    %c0_0 = arith.constant 0 : index
    %c0_1 = arith.constant 0 : index
    %0 = vector.load %arg1[%c0, %c0_0, %c0_1] : memref<1x264x4xbf16, #tpu.memory_space<vmem>>, vector<1x264x4xbf16>
    %1 = vector.shape_cast %0 : vector<1x264x4xbf16> to vector<264x4xbf16>
    %cst = arith.constant 0.000000e+00 : f32
    %2 = vector.broadcast %cst : f32 to vector<224x8xf32>
    %3 = vector.extract_strided_slice %1 {offsets = [0, 0], sizes = [224, 4], strides = [1, 1]} : vector<264x4xbf16> to vector<224x4xbf16>
    %c0_2 = arith.constant 0 : index
    %c0_3 = arith.constant 0 : index
    %c0_4 = arith.constant 0 : index
    %4 = vector.load %arg2[%c0_2, %c0_3, %c0_4] : memref<9x4x8xbf16, #tpu.memory_space<vmem>>, vector<1x4x8xbf16>
    %5 = vector.shape_cast %4 : vector<1x4x8xbf16> to vector<4x8xbf16>
    %cst_5 = arith.constant dense<0.000000e+00> : vector<224x8xf32>
    %6 = tpu.matmul %3, %5, %cst_5 {dimension_numbers = #tpu.dot_dimension_numbers<[1], [0], [0], [1], [0, 0, 1, 1], [], []>} : vector<224x4xbf16>, vector<4x8xbf16>, vector<224x8xf32> -> vector<224x8xf32>
    %7 = arith.addf %2, %6 : vector<224x8xf32>
    %8 = vector.extract_strided_slice %1 {offsets = [1, 0], sizes = [224, 4], strides = [1, 1]} : vector<264x4xbf16> to vector<224x4xbf16>
    %c1 = arith.constant 1 : index
    %c0_6 = arith.constant 0 : index
    %c0_7 = arith.constant 0 : index
    %9 = vector.load %arg2[%c1, %c0_6, %c0_7] : memref<9x4x8xbf16, #tpu.memory_space<vmem>>, vector<1x4x8xbf16>
    %10 = vector.shape_cast %9 : vector<1x4x8xbf16> to vector<4x8xbf16>
    %cst_8 = arith.constant dense<0.000000e+00> : vector<224x8xf32>
    %11 = tpu.matmul %8, %10, %cst_8 {dimension_numbers = #tpu.dot_dimension_numbers<[1], [0], [0], [1], [0, 0, 1, 1], [], []>} : vector<224x4xbf16>, vector<4x8xbf16>, vector<224x8xf32> -> vector<224x8xf32>
    %12 = arith.addf %7, %11 : vector<224x8xf32>
    %13 = vector.extract_strided_slice %1 {offsets = [2, 0], sizes = [224, 4], strides = [1, 1]} : vector<264x4xbf16> to vector<224x4xbf16>
    %c2 = arith.constant 2 : index
    %c0_9 = arith.constant 0 : index
    %c0_10 = arith.constant 0 : index
    %14 = vector.load %arg2[%c2, %c0_9, %c0_10] : memref<9x4x8xbf16, #tpu.memory_space<vmem>>, vector<1x4x8xbf16>
    %15 = vector.shape_cast %14 : vector<1x4x8xbf16> to vector<4x8xbf16>
    %cst_11 = arith.constant dense<0.000000e+00> : vector<224x8xf32>
    %16 = tpu.matmul %13, %15, %cst_11 {dimension_numbers = #tpu.dot_dimension_numbers<[1], [0], [0], [1], [0, 0, 1, 1], [], []>} : vector<224x4xbf16>, vector<4x8xbf16>, vector<224x8xf32> -> vector<224x8xf32>
    %17 = arith.addf %12, %16 : vector<224x8xf32>
    %18 = vector.extract_strided_slice %1 {offsets = [16, 0], sizes = [224, 4], strides = [1, 1]} : vector<264x4xbf16> to vector<224x4xbf16>
    %c3 = arith.constant 3 : index
    %c0_12 = arith.constant 0 : index
    %c0_13 = arith.constant 0 : index
    %19 = vector.load %arg2[%c3, %c0_12, %c0_13] : memref<9x4x8xbf16, #tpu.memory_space<vmem>>, vector<1x4x8xbf16>
    %20 = vector.shape_cast %19 : vector<1x4x8xbf16> to vector<4x8xbf16>
    %cst_14 = arith.constant dense<0.000000e+00> : vector<224x8xf32>
    %21 = tpu.matmul %18, %20, %cst_14 {dimension_numbers = #tpu.dot_dimension_numbers<[1], [0], [0], [1], [0, 0, 1, 1], [], []>} : vector<224x4xbf16>, vector<4x8xbf16>, vector<224x8xf32> -> vector<224x8xf32>
    %22 = arith.addf %17, %21 : vector<224x8xf32>
    %23 = vector.extract_strided_slice %1 {offsets = [17, 0], sizes = [224, 4], strides = [1, 1]} : vector<264x4xbf16> to vector<224x4xbf16>
    %c4 = arith.constant 4 : index
    %c0_15 = arith.constant 0 : index
    %c0_16 = arith.constant 0 : index
    %24 = vector.load %arg2[%c4, %c0_15, %c0_16] : memref<9x4x8xbf16, #tpu.memory_space<vmem>>, vector<1x4x8xbf16>
    %25 = vector.shape_cast %24 : vector<1x4x8xbf16> to vector<4x8xbf16>
    %cst_17 = arith.constant dense<0.000000e+00> : vector<224x8xf32>
    %26 = tpu.matmul %23, %25, %cst_17 {dimension_numbers = #tpu.dot_dimension_numbers<[1], [0], [0], [1], [0, 0, 1, 1], [], []>} : vector<224x4xbf16>, vector<4x8xbf16>, vector<224x8xf32> -> vector<224x8xf32>
    %27 = arith.addf %22, %26 : vector<224x8xf32>
    %28 = vector.extract_strided_slice %1 {offsets = [18, 0], sizes = [224, 4], strides = [1, 1]} : vector<264x4xbf16> to vector<224x4xbf16>
    %c5 = arith.constant 5 : index
    %c0_18 = arith.constant 0 : index
    %c0_19 = arith.constant 0 : index
    %29 = vector.load %arg2[%c5, %c0_18, %c0_19] : memref<9x4x8xbf16, #tpu.memory_space<vmem>>, vector<1x4x8xbf16>
    %30 = vector.shape_cast %29 : vector<1x4x8xbf16> to vector<4x8xbf16>
    %cst_20 = arith.constant dense<0.000000e+00> : vector<224x8xf32>
    %31 = tpu.matmul %28, %30, %cst_20 {dimension_numbers = #tpu.dot_dimension_numbers<[1], [0], [0], [1], [0, 0, 1, 1], [], []>} : vector<224x4xbf16>, vector<4x8xbf16>, vector<224x8xf32> -> vector<224x8xf32>
    %32 = arith.addf %27, %31 : vector<224x8xf32>
    %33 = vector.extract_strided_slice %1 {offsets = [32, 0], sizes = [224, 4], strides = [1, 1]} : vector<264x4xbf16> to vector<224x4xbf16>
    %c6 = arith.constant 6 : index
    %c0_21 = arith.constant 0 : index
    %c0_22 = arith.constant 0 : index
    %34 = vector.load %arg2[%c6, %c0_21, %c0_22] : memref<9x4x8xbf16, #tpu.memory_space<vmem>>, vector<1x4x8xbf16>
    %35 = vector.shape_cast %34 : vector<1x4x8xbf16> to vector<4x8xbf16>
    %cst_23 = arith.constant dense<0.000000e+00> : vector<224x8xf32>
    %36 = tpu.matmul %33, %35, %cst_23 {dimension_numbers = #tpu.dot_dimension_numbers<[1], [0], [0], [1], [0, 0, 1, 1], [], []>} : vector<224x4xbf16>, vector<4x8xbf16>, vector<224x8xf32> -> vector<224x8xf32>
    %37 = arith.addf %32, %36 : vector<224x8xf32>
    %38 = vector.extract_strided_slice %1 {offsets = [33, 0], sizes = [224, 4], strides = [1, 1]} : vector<264x4xbf16> to vector<224x4xbf16>
    %c7 = arith.constant 7 : index
    %c0_24 = arith.constant 0 : index
    %c0_25 = arith.constant 0 : index
    %39 = vector.load %arg2[%c7, %c0_24, %c0_25] : memref<9x4x8xbf16, #tpu.memory_space<vmem>>, vector<1x4x8xbf16>
    %40 = vector.shape_cast %39 : vector<1x4x8xbf16> to vector<4x8xbf16>
    %cst_26 = arith.constant dense<0.000000e+00> : vector<224x8xf32>
    %41 = tpu.matmul %38, %40, %cst_26 {dimension_numbers = #tpu.dot_dimension_numbers<[1], [0], [0], [1], [0, 0, 1, 1], [], []>} : vector<224x4xbf16>, vector<4x8xbf16>, vector<224x8xf32> -> vector<224x8xf32>
    %42 = arith.addf %37, %41 : vector<224x8xf32>
    %43 = vector.extract_strided_slice %1 {offsets = [34, 0], sizes = [224, 4], strides = [1, 1]} : vector<264x4xbf16> to vector<224x4xbf16>
    %c8 = arith.constant 8 : index
    %c0_27 = arith.constant 0 : index
    %c0_28 = arith.constant 0 : index
    %44 = vector.load %arg2[%c8, %c0_27, %c0_28] : memref<9x4x8xbf16, #tpu.memory_space<vmem>>, vector<1x4x8xbf16>
    %45 = vector.shape_cast %44 : vector<1x4x8xbf16> to vector<4x8xbf16>
    %cst_29 = arith.constant dense<0.000000e+00> : vector<224x8xf32>
    %46 = tpu.matmul %43, %45, %cst_29 {dimension_numbers = #tpu.dot_dimension_numbers<[1], [0], [0], [1], [0, 0, 1, 1], [], []>} : vector<224x4xbf16>, vector<4x8xbf16>, vector<224x8xf32> -> vector<224x8xf32>
    %47 = arith.addf %42, %46 : vector<224x8xf32>
    %c0_30 = arith.constant 0 : index
    %c0_31 = arith.constant 0 : index
    %48 = vector.load %arg3[%c0_30, %c0_31] : memref<1x8xf32, #tpu.memory_space<vmem>>, vector<1x8xf32>
    %49 = vector.broadcast %48 : vector<1x8xf32> to vector<224x8xf32>
    %50 = arith.addf %47, %49 : vector<224x8xf32>
    %cst_32 = arith.constant 0.000000e+00 : f32
    %51 = vector.broadcast %cst_32 : f32 to vector<224x8xf32>
    %52 = arith.maximumf %50, %51 : vector<224x8xf32>
    %c0_33 = arith.constant 0 : index
    %c0_34 = arith.constant 0 : index
    %53 = vector.load %arg4[%c0_33, %c0_34] : memref<1x224xf32, #tpu.memory_space<vmem>>, vector<1x224xf32>
    %cst_35 = arith.constant dense<0.000000e+00> : vector<1x8xf32>
    %54 = tpu.matmul %53, %52, %cst_35 {dimension_numbers = #tpu.dot_dimension_numbers<[1], [0], [0], [1], [0, 0, 1, 1], [], []>} : vector<1x224xf32>, vector<224x8xf32>, vector<1x8xf32> -> vector<1x8xf32>
    %c0_36 = arith.constant 0 : index
    %c0_37 = arith.constant 0 : index
    %55 = vector.load %arg5[%c0_36, %c0_37] : memref<8x128xf32, #tpu.memory_space<vmem>>, vector<8x128xf32>
    %cst_38 = arith.constant dense<0.000000e+00> : vector<1x128xf32>
    %56 = tpu.matmul %54, %55, %cst_38 {dimension_numbers = #tpu.dot_dimension_numbers<[1], [0], [0], [1], [0, 0, 1, 1], [], []>} : vector<1x8xf32>, vector<8x128xf32>, vector<1x128xf32> -> vector<1x128xf32>
    %c0_39 = arith.constant 0 : index
    %c0_40 = arith.constant 0 : index
    %57 = vector.load %arg6[%c0_39, %c0_40] : memref<1x128xf32, #tpu.memory_space<vmem>>, vector<1x128xf32>
    %58 = arith.addf %56, %57 : vector<1x128xf32>
    %c0_41 = arith.constant 0 : index
    %c0_42 = arith.constant 0 : index
    %c0_43 = arith.constant 0 : index
    %59 = vector.load %arg7[%c0_41, %c0_42, %c0_43] : memref<1x1x128xf32, #tpu.memory_space<vmem>>, vector<1x1x128xf32>
    %60 = vector.shape_cast %59 : vector<1x1x128xf32> to vector<1x128xf32>
    %61 = vector.shape_cast %58 : vector<1x128xf32> to vector<1x1x128xf32>
    tpu.vector_store %arg7[%c0_41, %c0_42, %c0_43], %61 {strides = array<i32>} : memref<1x1x128xf32, #tpu.memory_space<vmem>>, vector<1x1x128xf32>,
    return
  }
  func.func @transform_0(%arg0: i32) -> (i32, i32, i32) {
    %c0_i32 = arith.constant 0 : i32
    %c0_i32_0 = arith.constant 0 : i32
    %c0_i32_1 = arith.constant 0 : i32
    return %arg0, %c0_i32, %c0_i32_0 : i32, i32, i32
  }
  func.func @transform_1(%arg0: i32) -> (i32, i32, i32) {
    %c0_i32 = arith.constant 0 : i32
    %c0_i32_0 = arith.constant 0 : i32
    %c0_i32_1 = arith.constant 0 : i32
    %c0_i32_2 = arith.constant 0 : i32
    return %c0_i32, %c0_i32_0, %c0_i32_1 : i32, i32, i32
  }
  func.func @transform_2(%arg0: i32) -> (i32, i32) {
    %c0_i32 = arith.constant 0 : i32
    %c0_i32_0 = arith.constant 0 : i32
    %c0_i32_1 = arith.constant 0 : i32
    return %c0_i32, %c0_i32_0 : i32, i32
  }
  func.func @transform_3(%arg0: i32) -> (i32, i32) {
    %c0_i32 = arith.constant 0 : i32
    %c0_i32_0 = arith.constant 0 : i32
    %c0_i32_1 = arith.constant 0 : i32
    return %c0_i32, %c0_i32_0 : i32, i32
  }
  func.func @transform_4(%arg0: i32) -> (i32, i32) {
    %c0_i32 = arith.constant 0 : i32
    %c0_i32_0 = arith.constant 0 : i32
    %c0_i32_1 = arith.constant 0 : i32
    return %c0_i32, %c0_i32_0 : i32, i32
  }
  func.func @transform_5(%arg0: i32) -> (i32, i32) {
    %c0_i32 = arith.constant 0 : i32
    %c0_i32_0 = arith.constant 0 : i32
    %c0_i32_1 = arith.constant 0 : i32
    return %c0_i32, %c0_i32_0 : i32, i32
  }
  func.func @transform_6(%arg0: i32) -> (i32, i32, i32) {
    %c0_i32 = arith.constant 0 : i32
    %c0_i32_0 = arith.constant 0 : i32
    %c0_i32_1 = arith.constant 0 : i32
    return %arg0, %c0_i32, %c0_i32_0 : i32, i32, i32
  }
}

module attributes {stable_mosaic.version = 11 : i64} {
  func.func @_word_mlp_kernel(%arg0: i32, %arg1: memref<2xi32, #tpu.memory_space<smem>>, %arg2: memref<1x1x128xbf16, #tpu.memory_space<vmem>>, %arg3: memref<128x128xbf16, #tpu.memory_space<vmem>>, %arg4: memref<1x128xf32, #tpu.memory_space<vmem>>, %arg5: memref<128x128xbf16, #tpu.memory_space<vmem>>, %arg6: memref<1x128xf32, #tpu.memory_space<vmem>>, %arg7: memref<1x1x128xf32, #tpu.memory_space<vmem>>) attributes {dimension_semantics = [#tpu.dimension_semantics<parallel>], iteration_bounds = array<i64: 2>, scalar_prefetch = 1 : i64, scratch_operands = 0 : i64, tpu.core_type = #tpu.core_type<tc>, window_params = [{transform_indices = @transform_0, window_bounds = array<i64: 1, 1, 128>}, {pipeline_mode = #tpu.pipeline_mode<synchronous>, transform_indices = @transform_1, window_bounds = array<i64: 128, 128>}, {pipeline_mode = #tpu.pipeline_mode<synchronous>, transform_indices = @transform_2, window_bounds = array<i64: 1, 128>}, {pipeline_mode = #tpu.pipeline_mode<synchronous>, transform_indices = @transform_3, window_bounds = array<i64: 128, 128>}, {pipeline_mode = #tpu.pipeline_mode<synchronous>, transform_indices = @transform_4, window_bounds = array<i64: 1, 128>}, {transform_indices = @transform_5, window_bounds = array<i64: 1, 1, 128>}]} {
    %c0 = arith.constant 0 : index
    %c0_0 = arith.constant 0 : index
    %c0_1 = arith.constant 0 : index
    %0 = vector.load %arg2[%c0, %c0_0, %c0_1] : memref<1x1x128xbf16, #tpu.memory_space<vmem>>, vector<1x1x128xbf16>
    %1 = vector.shape_cast %0 : vector<1x1x128xbf16> to vector<1x128xbf16>
    %c0_2 = arith.constant 0 : index
    %c0_3 = arith.constant 0 : index
    %2 = vector.load %arg3[%c0_2, %c0_3] : memref<128x128xbf16, #tpu.memory_space<vmem>>, vector<128x128xbf16>
    %cst = arith.constant dense<0.000000e+00> : vector<1x128xf32>
    %3 = tpu.matmul %1, %2, %cst {dimension_numbers = #tpu.dot_dimension_numbers<[1], [0], [0], [1], [0, 0, 1, 1], [], []>} : vector<1x128xbf16>, vector<128x128xbf16>, vector<1x128xf32> -> vector<1x128xf32>
    %c0_4 = arith.constant 0 : index
    %c0_5 = arith.constant 0 : index
    %4 = vector.load %arg4[%c0_4, %c0_5] : memref<1x128xf32, #tpu.memory_space<vmem>>, vector<1x128xf32>
    %5 = arith.addf %3, %4 : vector<1x128xf32>
    %cst_6 = arith.constant 0.000000e+00 : f32
    %6 = vector.broadcast %cst_6 : f32 to vector<1x128xf32>
    %7 = arith.maximumf %5, %6 : vector<1x128xf32>
    %8 = arith.truncf %7 : vector<1x128xf32> to vector<1x128xbf16>
    %c0_7 = arith.constant 0 : index
    %c0_8 = arith.constant 0 : index
    %9 = vector.load %arg5[%c0_7, %c0_8] : memref<128x128xbf16, #tpu.memory_space<vmem>>, vector<128x128xbf16>
    %cst_9 = arith.constant dense<0.000000e+00> : vector<1x128xf32>
    %10 = tpu.matmul %8, %9, %cst_9 {dimension_numbers = #tpu.dot_dimension_numbers<[1], [0], [0], [1], [0, 0, 1, 1], [], []>} : vector<1x128xbf16>, vector<128x128xbf16>, vector<1x128xf32> -> vector<1x128xf32>
    %c0_10 = arith.constant 0 : index
    %c0_11 = arith.constant 0 : index
    %11 = vector.load %arg6[%c0_10, %c0_11] : memref<1x128xf32, #tpu.memory_space<vmem>>, vector<1x128xf32>
    %12 = arith.addf %10, %11 : vector<1x128xf32>
    %cst_12 = arith.constant 0.000000e+00 : f32
    %13 = vector.broadcast %cst_12 : f32 to vector<1x128xf32>
    %14 = arith.maximumf %12, %13 : vector<1x128xf32>
    %c0_13 = arith.constant 0 : index
    %c0_14 = arith.constant 0 : index
    %c0_15 = arith.constant 0 : index
    %15 = vector.load %arg7[%c0_13, %c0_14, %c0_15] : memref<1x1x128xf32, #tpu.memory_space<vmem>>, vector<1x1x128xf32>
    %16 = vector.shape_cast %15 : vector<1x1x128xf32> to vector<1x128xf32>
    %17 = vector.shape_cast %14 : vector<1x128xf32> to vector<1x1x128xf32>
    tpu.vector_store %arg7[%c0_13, %c0_14, %c0_15], %17 {strides = array<i32>} : memref<1x1x128xf32, #tpu.memory_space<vmem>>, vector<1x1x128xf32>,
    return
  }
  func.func @transform_0(%arg0: i32, %arg1: memref<2xi32, #tpu.memory_space<smem>>) -> (i32, i32, i32) {
    %0 = arith.index_cast %arg0 : i32 to index
    %1 = memref.load %arg1[%0] : memref<2xi32, #tpu.memory_space<smem>>
    %c0_i32 = arith.constant 0 : i32
    %c0_i32_0 = arith.constant 0 : i32
    %c0_i32_1 = arith.constant 0 : i32
    return %1, %c0_i32, %c0_i32_0 : i32, i32, i32
  }
  func.func @transform_1(%arg0: i32, %arg1: memref<2xi32, #tpu.memory_space<smem>>) -> (i32, i32) {
    %c0_i32 = arith.constant 0 : i32
    %c0_i32_0 = arith.constant 0 : i32
    %c0_i32_1 = arith.constant 0 : i32
    return %c0_i32, %c0_i32_0 : i32, i32
  }
  func.func @transform_2(%arg0: i32, %arg1: memref<2xi32, #tpu.memory_space<smem>>) -> (i32, i32) {
    %c0_i32 = arith.constant 0 : i32
    %c0_i32_0 = arith.constant 0 : i32
    %c0_i32_1 = arith.constant 0 : i32
    return %c0_i32, %c0_i32_0 : i32, i32
  }
  func.func @transform_3(%arg0: i32, %arg1: memref<2xi32, #tpu.memory_space<smem>>) -> (i32, i32) {
    %c0_i32 = arith.constant 0 : i32
    %c0_i32_0 = arith.constant 0 : i32
    %c0_i32_1 = arith.constant 0 : i32
    return %c0_i32, %c0_i32_0 : i32, i32
  }
  func.func @transform_4(%arg0: i32, %arg1: memref<2xi32, #tpu.memory_space<smem>>) -> (i32, i32) {
    %c0_i32 = arith.constant 0 : i32
    %c0_i32_0 = arith.constant 0 : i32
    %c0_i32_1 = arith.constant 0 : i32
    return %c0_i32, %c0_i32_0 : i32, i32
  }
  func.func @transform_5(%arg0: i32, %arg1: memref<2xi32, #tpu.memory_space<smem>>) -> (i32, i32, i32) {
    %c0_i32 = arith.constant 0 : i32
    %c0_i32_0 = arith.constant 0 : i32
    %c0_i32_1 = arith.constant 0 : i32
    return %arg0, %c0_i32, %c0_i32_0 : i32, i32, i32
  }
}

</mosaic_0001>

<bundles_post_ra>
// kernel: dem_ordinary_forward.3
= control target key start
LH: loop header
LB: loop body
LE: loop exit
PB: predicated region body
PF: predicated region fallthrough
CT: control target
= control target key end

     0   :  { %s920_s0 = inlined_call_operand.vmem [shape: s32[2], index: 0, kind: input, shape index: {}]   ;;  %s921_s1 = inlined_call_operand.vmem [shape: bf16[5,1,128], index: 1, kind: input, shape index: {}]   ;;  %s922_s2 = inlined_call_operand.vmem [shape: bf16[128,128], index: 2, kind: input, shape index: {}]   ;;  %s923_s3 = inlined_call_operand.vmem [shape: f32[1,128], index: 3, kind: input, shape index: {}]   ;;  %s924_s4 = inlined_call_operand.vmem [shape: bf16[128,128], index: 4, kind: input, shape index: {}]   ;;  %s925_s5 = inlined_call_operand.vmem [shape: f32[1,128], index: 5, kind: input, shape index: {}]   ;;  %s926_s6 = inlined_call_operand.hbm [shape: f32[2,1,128], index: 6, kind: output, shape index: {}]  }
   0x1   :  { %s11_s23 = sshll.u32 %s920_s0, 4  ;;  %s12_s23 = int_to_ptr.vmem [resolvable:$true] %s11_s23 }
   0x2   :  { %s650_s24 = scalar_lea.vmem %s12_s23, 16  ;;  %p655_p1 = scmp.lt.s32.totalorder %s12_s23, %s12_s23 }
   0x3   :  { %p651_p0 = scmp.ne.s32.totalorder %s12_s23, %s650_s24  ;;  %p656_p2 = scmp.lt.s32.totalorder %s650_s24, %s650_s24 }
   0x5   :  { %p657_p3 = por %p656_p2, %p655_p1 }
   0x7   :  { %p658_p4 = pnand %p657_p3, %p651_p0 }
   0x9   :  { %661 = shalt.err (!%p658_p4)  }
   0xa   :  { %s726_s25 = smov [#allocation3]  }
   0xb   :  { %14 = dma.vmem_to_smem %s12_s23, 16, %s726_s25, [#allocation2] }
   0xc   :  { %704 = dma.done.wait [#allocation2], 16 }
   0xd   :  { %705 = vsyncadd [#allocation2], 4294967280 }
   0xe   :  { %16 = sfence }
   0xf   :  { %17 = vsyncpa [#allocation5], 0 }
  0x10   :  { %19 = vsyncpa [#allocation5 + $0x1], 0  ;;  %s768_s26 = smov 0   ;;  %s770_s27 = smov 0  }
  0x11   :  { %s772_s0 = smov 0   ;;  %s774_s28 = smov 0  }
  0x12 LB: > { %s789_s29 = sadd.s32 4294967295, %s724_s28   ;;  %s511_s30 = sadd.s32 4294967294, %s724_s28   ;;  %s724_s28 = sphi %s774_s28, %s932_s28   ;;  %s720_s0 = sphi %s772_s0, %s931_s0   ;;  %s716_s27 = sphi %s770_s27, %s930_s27   ;;  %s712_s26 = sphi %s768_s26, %s929_s26  }
  0x13   : > { %s793_s7 = sadd.s32 1, %s724_s28   ;;  %s144_s8 = sadd.s32 1, %s720_s0 }
  0x14   : > { %s141_s9 = ssub.s32 %s724_s28, %s793_s7  ;;  %p154_p5 = scmp.ne.s32.totalorder %s720_s0, %s716_s27 }
  0x15   : > { %p142_p6 = scmp.eq.s32.totalorder %s141_s9, 0  ;;  %p155_p7 = scmp.eq.s32.totalorder %s789_s29, 1 }
  0x16   : > { %p160_p8 = scmp.ne.s32.totalorder %s716_s27, %s712_s26  ;;  %p161_p9 = scmp.eq.s32.totalorder %s511_s30, 1 }
  0x17   : > { %s804_s10 = scalar_select %p142_p6, %s720_s0, %s144_s8  }
  0x18   : > { %p806_p10 = por %p155_p7, %p154_p5  ;;  %p810_p11 = por %p161_p9, %p160_p8 }
  0x19   : > { %p514_p12 = scmp.ge.s32.totalorder %s724_s28, 1  ;;  %p199_p13 = scmp.lt.s32.totalorder %s724_s28, 3 }
  0x1b   : > { %p200_p0 = pnand %p514_p12, %p199_p13 }
  0x1c   : > { %s225_s25 = sld [smem:[#allocation3 + %s789_s29]] (!%p200_p0)  ;;  %s223_s19 = sand.u32 (!%p200_p0), 1, %s716_s27  }
  0x1d   : > { %203 = sbr.rel (%p200_p0) target bundleno = 477 (0x1dd), region = 40  ;;  %s531_s22 = sshll.u32 (!%p200_p0), %s789_s29, 4 }
  0x1e   : > { %s224_s23 = scalar_lea.vmem (!%p200_p0), [#allocation4], %s223_s19  ;;  %s879_s9 = scalar_lea.hbm (!%p200_p0), %s926_s6, %s531_s22 }
  0x1f   : > { %s459_s24 = sshll.u32 (!%p200_p0), %s224_s23, 4  ;;  %s729_s14 = smov (!%p200_p0), [#allocation4]   ;;  %s881_s24 = int_to_ptr.vmem [resolvable:$true] %s459_s24 }
  0x20   : > { %s662_s29 = scalar_lea.vmem (!%p200_p0), %s881_s24, 16  ;;  %s666_s15 = sshll.u32 (!%p200_p0), %s729_s14, 4  ;;  %s667_s15 = int_to_ptr.vmem [resolvable:$false] %s666_s15 }
  0x21   : > { %p663_p2 = scmp.ne.s32.totalorder (!%p200_p0), %s881_s24, %s662_s29  ;;  %s668_s16 = scalar_lea.vmem (!%p200_p0), %s667_s15, 32 }
  0x22   : > { %v634_v0 = vld [vmem:[%s922_s2 + $0x38] sm:$0xff]   ;;  %v727_v1 = vmov 0.0   ;;  %v635_v2 = vld [vmem:[%s922_s2 + $0x30] sm:$0xff]   ;;  %vm728_vm0 = vmmov 0   ;;  %v636_v3 = vld [vmem:[%s922_s2 + $0x28] sm:$0xff]   ;;  %p226_p1 = scmp.lt.s32.totalorder %s225_s25, 4  ;;  %p669_p5 = scmp.lt.s32.totalorder %s881_s24, %s667_s15 }
  0x23   : > { %552 = vmatprep.subr.bf16.mxu0 %v727_v1  ;;  %572 = vmatprep.subr.bf16.mxu1 %v727_v1  ;;  %v642_v4 = vld [vmem:[%s924_s4 + $0x38] sm:$0xff]   ;;  %v637_v5 = vld [vmem:[%s922_s2 + $0x20] sm:$0xff]   ;;  %v643_v6 = vld [vmem:[%s924_s4 + $0x30] sm:$0xff]   ;;  %p664_p3 = pnand %p663_p2, %p806_p10  ;;  %p670_p6 = scmp.lt.s32.totalorder %s668_s16, %s662_s29 }
  0x24   : > { %553 = vmatpush3.bf16.msra.mxu0 %v634_v0  ;;  %568 = vmatprep.mubr.msk.bf16.mxu0 %vm728_vm0, %v727_v1  ;;  %v638_v7 = vld [vmem:[%s922_s2 + $0x18] sm:$0xff]   ;;  %v644_v8 = vld [vmem:[%s924_s4 + $0x28] sm:$0xff]   ;;  %v639_v9 = vld [vmem:[%s922_s2 + $0x10] sm:$0xff]   ;;  %s934_s25 = smov (!%p226_p1, %s225_s25), 4 }
  0x25   : > { %554 = vmatprep.subr.bf16.mxu0 %v727_v1  ;;  %588 = vmatprep.mubr.msk.bf16.mxu1 %vm728_vm0, %v727_v1  ;;  %v645_v10 = vld [vmem:[%s924_s4 + $0x20] sm:$0xff]   ;;  %v640_v11 = vld [vmem:[%s922_s2 + $0x8] sm:$0xff]   ;;  %v646_v12 = vld [vmem:[%s924_s4 + $0x18] sm:$0xff]   ;;  %s228_s13 = scalar_lea.vmem %s921_s1, %s934_s25  ;;  %p665_p4 = pneg %p664_p3 }
  0x26   : > { %573 = vmatpush3.bf16.msra.mxu1 %v642_v4  ;;  %v641_v13 = vld [vmem:[%s922_s2] sm:$0xff]   ;;  %v647_v14 = vld [vmem:[%s924_s4 + $0x10] sm:$0xff]   ;;  %v648_v16 = vld [vmem:[%s924_s4 + $0x8] sm:$0xff]   ;;  %p671_p7 = por %p670_p6, %p669_p5 }
  0x27   : > { %574 = vmatprep.subr.bf16.mxu1 %v727_v1  ;;  %v231_v15 = vld [vmem:[%s228_s13] sm:$0x1]  ;;  %s447_s13 = scalar_lea.sflag [#allocation5], %s223_s19 }
  0x28   : > { %555 = vmatpush3.bf16.msra.mxu0 %v635_v2  ;;  %v649_v17 = vld [vmem:[%s924_s4] sm:$0xff]   ;;  %p672_p8 = pnand %p671_p7, %p665_p4 }
  0x29   : > { %556 = vmatprep.subr.bf16.mxu0 %v727_v1  ;;  %v248_v18 = vld [vmem:[%s923_s3] sm:$0x1] }
  0x2a   : > { %575 = vmatpush3.bf16.msra.mxu1 %v643_v6  ;;  %v355_v26 = vld [vmem:[%s925_s5] sm:$0x1] }
  0x2b   : > { %576 = vmatprep.subr.bf16.mxu1 %v727_v1 }
  0x2c   : > { %557 = vmatpush3.bf16.msra.mxu0 %v636_v3 }
  0x2d   : > { %558 = vmatprep.subr.bf16.mxu0 %v727_v1 }
  0x2e   : > { %577 = vmatpush3.bf16.msra.mxu1 %v644_v8 }
  0x2f   : > { %578 = vmatprep.subr.bf16.mxu1 %v727_v1 }
  0x30   : > { %559 = vmatpush3.bf16.msra.mxu0 %v637_v5 }
  0x31   : > { %560 = vmatprep.subr.bf16.mxu0 %v727_v1 }
  0x32   : > { %579 = vmatpush3.bf16.msra.mxu1 %v645_v10 }
  0x33   : > { %580 = vmatprep.subr.bf16.mxu1 %v727_v1 }
  0x34   : > { %561 = vmatpush3.bf16.msra.mxu0 %v638_v7 }
  0x35   : > { %562 = vmatprep.subr.bf16.mxu0 %v727_v1 }
  0x36   : > { %581 = vmatpush3.bf16.msra.mxu1 %v646_v12 }
  0x37   : > { %582 = vmatprep.subr.bf16.mxu1 %v727_v1 }
  0x38   : > { %563 = vmatpush3.bf16.msra.mxu0 %v639_v9 }
  0x39   : > { %564 = vmatprep.subr.bf16.mxu0 %v727_v1 }
  0x3a   : > { %583 = vmatpush3.bf16.msra.mxu1 %v647_v14 }
  0x3b   : > { %584 = vmatprep.subr.bf16.mxu1 %v727_v1 }
  0x3c   : > { %565 = vmatpush3.bf16.msra.mxu0 %v640_v11 }
  0x3d   : > { %566 = vmatprep.subr.bf16.mxu0 %v727_v1 }
  0x3e   : > { %585 = vmatpush3.bf16.msra.mxu1 %v648_v16 }
  0x3f   : > { %586 = vmatprep.subr.bf16.mxu1 %v727_v1 }
  0x40   : > { %567 = vmatpush3.bf16.msra.mxu0 %v641_v13 }
  0x42   : > { %587 = vmatpush3.bf16.msra.mxu1 %v649_v17 }
  0x43   : > { %569 = vmatmul.mubr.bf16.vlgmr.msra.gmra.mxu0 %v231_v15 }
 0x103   : > { %v331_v19 = vpop.f32.mrf.mxu0 }
 0x104   : > { %v332_v20 = vadd.f32 %v331_v19, %v248_v18 }
 0x105   : > { %v570_v21 = vpop.f32.mrf.mxu0 }
 0x106   : > { %v337_v22 = vmax.f32 %v332_v20, 0.0 }
 0x107   : > { %v334_v23 = vpop.f32.mrf.mxu0 }
 0x108   : > { %v338_v24 = vpack.c.bf16 %v337_v22, %v337_v22 }
 0x109   : > { %v571_v25 = vpop.f32.mrf.mxu0 }
 0x10a   : > { %589 = vmatmul.mubr.bf16.vlgmr.msra.gmra.mxu1 %v338_v24 }
 0x1ca   : > { %v438_v27 = vpop.f32.mrf.mxu1 }
 0x1cb   : > { %v439_v28 = vadd.f32 %v438_v27, %v355_v26 }
 0x1cc   : > { %v590_v29 = vpop.f32.mrf.mxu1 }
 0x1cd   : > { %v444_v30 = vmax.f32 %v439_v28, 0.0 }
 0x1ce   : > { %v441_v31 = vpop.f32.mrf.mxu1 }
 0x1cf   : > { %445 = vst [vmem:[%s224_s23] sm:$0x1] %v444_v30 }
 0x1d0   : > { %v591_v32 = vpop.f32.mrf.mxu1 }
 0x1d1   : > { %675 = shalt.err (!%p672_p8)
}
 0x1d2   : > { %s676_s17 = scalar_lea.hbm %s879_s9, 16  ;;  %s680_s19 = scalar_lea.hbm %s926_s6, 32 }
 0x1d3   : > { %p677_p9 = scmp.ne.s32.totalorder %s879_s9, %s676_s17  ;;  %p681_p0 = scmp.lt.s32.totalorder %s879_s9, %s926_s6 }
 0x1d4   : > { %p682_p1 = scmp.lt.s32.totalorder %s680_s19, %s676_s17 }
 0x1d5   : > { %p678_p12 = pnand %p677_p9, %p806_p10 }
 0x1d6   : > { %p683_p2 = por %p682_p1, %p681_p0 }
 0x1d7   : > { %p679_p13 = pneg %p678_p12 }
 0x1d9   : > { %p684_p3 = pnand %p683_p2, %p679_p13 }
 0x1db   : > { %687 = shalt.err (!%p684_p3)
}
 0x1dc   : > { %592 = dma.vmem_to_hbm [thread:$0]  (%p806_p10), %s881_s24, 16, %s879_s9, %s447_s13  }
 0x1dd PF: > { %p598_p4 = scmp.ge.s32.totalorder %s724_s28, 2  ;;  %s471_s22 = sand.u32 1, %s712_s26  }
 0x1de   : > { %s472_s23 = scalar_lea.sflag [#allocation5], %s471_s22 }
 0x1df   : > { %p595_p5 = pnand %p598_p4, %p810_p11 }
 0x1e1   : > { %p596_p6 = pneg %p595_p5 }
 0x1e3   : > { %707 = dma.done.wait (%p596_p6), %s472_s23, 16  }
 0x1e4   : > { %709 = vsyncadd (%p596_p6), %s472_s23, 4294967280  ;;  %p22_p7 = scmp.ge.s32.totalorder %s793_s7, 4   ;;  %s929_s26 = smov %s716_s27 }
 0x1e5   : > { %s930_s27 = smov %s720_s0  ;;  %s931_s0 = smov %s804_s10 }
 0x1e6   : > { %s932_s28 = smov %s793_s7  ;;  %24 = sbr.rel (!%p22_p7) target bundleno = 18 (0x12), region = 75 }
 0x1eb   :  { %476 = vsyncpa [#allocation5], 1 }
 0x1ec   :  { %478 = vsyncpa [#allocation5 + $0x1], 1 }

// kernel: dem_ordinary_forward.2
= control target key start
LH: loop header
LB: loop body
LE: loop exit
PB: predicated region body
PF: predicated region fallthrough
CT: control target
= control target key end

     0   :  { %11 = vsyncpa [#allocation3], 0  ;;  %s4374_s0 = inlined_call_operand.vmem [shape: bf16[2,264,4], index: 0, kind: input, shape index: {}]   ;;  %s4375_s1 = inlined_call_operand.vmem [shape: bf16[9,4,8], index: 1, kind: input, shape index: {}]   ;;  %s4376_s2 = inlined_call_operand.vmem [shape: f32[1,8], index: 2, kind: input, shape index: {}]   ;;  %s4377_s3 = inlined_call_operand.vmem [shape: f32[1,224], index: 3, kind: input, shape index: {}]   ;;  %s4378_s4 = inlined_call_operand.vmem [shape: f32[8,128], index: 4, kind: input, shape index: {}]   ;;  %s4379_s5 = inlined_call_operand.vmem [shape: f32[1,128], index: 5, kind: input, shape index: {}]   ;;  %s4380_s6 = inlined_call_operand.hbm [shape: f32[2,1,128], index: 6, kind: output, shape index: {}]  }
   0x1   :  { %13 = vsyncpa [#allocation3 + $0x1], 0  ;;  %s3277_s21 = smov 0   ;;  %s3279_s22 = smov 0  }
   0x2   :  { %s3281_s23 = smov 0   ;;  %s3283_s24 = smov 0  }
   0x3 LB: > { %s3298_s25 = sadd.s32 4294967295, %s3237_s24   ;;  %s2528_s26 = sadd.s32 4294967294, %s3237_s24   ;;  %s3237_s24 = sphi %s3283_s24, %s4421_s24   ;;  %s3233_s23 = sphi %s3281_s23, %s4420_s23   ;;  %s3229_s22 = sphi %s3279_s22, %s4419_s22   ;;  %s3225_s21 = sphi %s3277_s21, %s4418_s21  }
   0x4   : > { %s3302_s27 = sadd.s32 1, %s3237_s24   ;;  %s157_s28 = sadd.s32 1, %s3233_s23 }
   0x5   : > { %s154_s29 = ssub.s32 %s3237_s24, %s3302_s27  ;;  %p167_p0 = scmp.ne.s32.totalorder %s3233_s23, %s3229_s22 }
   0x6   : > { %p155_p1 = scmp.eq.s32.totalorder %s154_s29, 0  ;;  %p168_p2 = scmp.eq.s32.totalorder %s3298_s25, 1 }
   0x7   : > { %p173_p3 = scmp.ne.s32.totalorder %s3229_s22, %s3225_s21  ;;  %p174_p4 = scmp.eq.s32.totalorder %s2528_s26, 1 }
   0x8   : > { %s3313_s30 = scalar_select %p155_p1, %s3233_s23, %s157_s28  }
   0x9   : > { %p3315_p5 = por %p168_p2, %p167_p0  ;;  %p3319_p6 = por %p174_p4, %p173_p3 }
   0xa   : > { %p2531_p7 = scmp.ge.s32.totalorder %s3237_s24, 1  ;;  %p215_p8 = scmp.lt.s32.totalorder %s3237_s24, 3 }
   0xc   : > { %p216_p9 = pnand %p2531_p7, %p215_p8 }
   0xe   : > { %219 = sbr.rel (%p216_p9) target bundleno = 918 (0x396), region = 44 }
  0x13   : > { %v2533_v0 = vld [vmem:[%s4375_s1 + $0x2] sm:$0x3]  ;;  %vm519_vm0 = vcmask 1041408   ;;  %p244_p10 = scmp.lt.s32.totalorder %s3298_s25, 1  ;;  %v2577_v2 = vld [vmem:[%s4375_s1 + $0x4] sm:$0x3] }
  0x14   : > { %3106 = vmatprep.subr.msk.bf16.mxu0 %vm519_vm0, %v2533_v0  ;;  %3107 = vmatprep.subr.msk.bf16.mxu1 %vm519_vm0, %v2533_v0  ;;  %v521_v1 = vsel %vm519_vm0, %v2533_v0, 0  ;;  %v283_v3 = vld [vmem:[%s4375_s1] sm:$0x3]  ;;  %vm359_vm1 = vsmask.f32 7424  ;;  %vm476_vm2 = vcmask 31744  }
  0x15   : > { %2830 = vmatpush3.bf16.msra.mxu0 %v521_v1  ;;  %3105 = vmatpush3.bf16.msra.mxu1 %v521_v1  ;;  %s245_s15 = scalar_select %p244_p10, %s3298_s25, 1  ;;  %v919_v12 = vsel %vm519_vm0, %v2577_v2, 0  ;;  %v697_v13 = vsel %vm519_vm0, %v283_v3, 0  ;;  %v3386_v33 = vld [vmem:[%s4375_s1 + $0x8] sm:$0x3]  ;;  %vm846_vm3 = vcmask 1046528  }
  0x16   : > { %3109 = vmatprep.subr.msk.bf16.mxu0 %vm519_vm0, %v2577_v2  ;;  %3108 = vmatprep.subr.msk.bf16.mxu1 %vm519_vm0, %v283_v3  ;;  %v3408_v44 = vld [vmem:[%s4375_s1 + $0x6] sm:$0x3]  ;;  %vm2310_vm4 = vcmask 785408   ;;  %vm3240_vm5 = vmmov 0   ;;  %vm2385_vm6 = vcmask 64512   ;;  %s242_s29 = sand.u32 1, %s3229_s22  }
  0x17   : > { %s3116_s16 = smul.u32 132, %s245_s15  ;;  %s2689_s11 = sshll.u32 %s3298_s25, 4 }
  0x18   : > { %s243_s12 = scalar_lea.vmem [#allocation2], %s242_s29  ;;  %s2461_s17 = scalar_lea.sflag [#allocation3], %s242_s29 }
  0x19   : > { %s3344_s19 = scalar_lea.vmem %s4374_s0, %s3116_s16  ;;  %s2473_s13 = sshll.u32 %s243_s12, 4  ;;  %s2474_s13 = int_to_ptr.vmem [resolvable:$true] %s2473_s13 }
  0x1a   : > { %v3347_v4 = vld [vmem:[%s3344_s19] sm:$0xff]   ;;  %v3350_v5 = vld [vmem:[%s3344_s19 + $0x8] sm:$0xff]   ;;  %v3365_v16 = vld [vmem:[%s3344_s19 + $0x10] sm:$0xff]   ;;  %s4339_s16 = scalar_lea.hbm %s4380_s6, %s2689_s11  ;;  %s3177_s18 = scalar_lea.vmem %s2474_s13, 16 }
  0x1b   : > { %v361_v6 = vshrl.u32 %v3347_v4, 16  ;;  %v363_v7 = vshll.u32 %v3347_v4, 16  ;;  %v368_v8 = vshll.u32 %v3350_v5, 16  ;;  %v372_v9 = vshrl.u32 %v3350_v5, 16  ;;  %v3357_v10 = vld [vmem:[%s3344_s19 + $0x40] sm:$0xff]   ;;  %v3360_v11 = vld [vmem:[%s3344_s19 + $0x48] sm:$0xff]   ;;  %p3178_p11 = scmp.ne.s32.totalorder %s2474_s13, %s3177_s18 }
  0x1c   : > { %v3368_v17 = vld [vmem:[%s3344_s19 + $0x50] sm:$0xff]   ;;  %v424_v18 = vshll.u32 %v3357_v10, 16  ;;  %v428_v19 = vshrl.u32 %v3357_v10, 16  ;;  %v432_v20 = vshll.u32 %v3360_v11, 16  ;;  %v436_v21 = vshrl.u32 %v3360_v11, 16  ;;  %v3379_v28 = vld [vmem:[%s3344_s19 + $0x18] sm:$0xff]  }
  0x1d   : > { %v365_v14 = vrot.slane %v363_v7, 1  ;;  %v370_v15 = vrot.slane %v368_v8, 1  ;;  %v376_v24 = vshll.u32 %v3365_v16, 16  ;;  %v440_v25 = vshll.u32 %v3368_v17, 16  ;;  %v3392_v37 = vld [vmem:[%s3344_s19 + $0x58] sm:$0xff]   ;;  %v3396_v39 = vld [vmem:[%s3344_s19 + $0x20] sm:$0xff]   ;;  %p3179_p12 = pnand %p3178_p11, %p3315_p5 }
  0x1e   : > { %v3376_v26 = vrot.slane %v424_v18, 1  ;;  %v434_v27 = vrot.slane %v432_v20, 1  ;;  %v380_v29 = vshrl.u32 %v3365_v16, 16  ;;  %v384_v36 = vshll.u32 %v3379_v28, 16  ;;  %v3403_v43 = vld [vmem:[%s3344_s19 + $0x60] sm:$0xff]   ;;  %v3419_v49 = vld [vmem:[%s3344_s19 + $0x28] sm:$0xff]  }
  0x1f   : > { %v366_v22 = vor.u32 %v365_v14, %v361_v6  ;;  %v374_v23 = vor.u32 %v372_v9, %v370_v15  ;;  %v378_v31 = vrot.slane %v376_v24, 1  ;;  %v442_v32 = vrot.slane %v440_v25, 1  ;;  %v3439_v61 = vld [vmem:[%s3344_s19 + $0x68] sm:$0xff]   ;;  %v3443_v63 = vld [vmem:[%s3344_s19 + $0x30] sm:$0xff]   ;;  %v3460_v14 = vld [vmem:[%s3344_s19 + $0x38] sm:$0xff]   ;;  %p3180_p13 = pneg %p3179_p12 }
  0x20   : > { %v430_v34 = vor.u32 %v428_v19, %v3376_v26  ;;  %v438_v35 = vor.u32 %v436_v21, %v434_v27  ;;  %v444_v38 = vshrl.u32 %v3368_v17, 16  ;;  %v388_v42 = vshrl.u32 %v3379_v28, 16  ;;  %v278_v8 = vld [vmem:[%s3344_s19 + $0x70] sm:$0xf] }
  0x21   : > { %v371_v30 = vsel %vm359_vm1, %v366_v22, %v370_v15  ;;  %v3399_v40 = vsel %vm359_vm1, %v374_v23, %v378_v31  ;;  %v382_v41 = vor.u32 %v380_v29, %v378_v31  ;;  %v386_v47 = vrot.slane %v384_v36, 1 }
  0x22   : > { %2831 = vmatprep.mubr.msk.bf16.mxu0 %vm476_vm2, %v371_v30  ;;  %v3411_v45 = vsel %vm359_vm1, %v430_v34, %v434_v27  ;;  %v3416_v46 = vsel %vm359_vm1, %v438_v35, %v442_v32  ;;  %v446_v48 = vor.u32 %v444_v38, %v442_v32  ;;  %v448_v50 = vshll.u32 %v3392_v37, 16 }
  0x23   : > { %2832 = vmatmul.mubr.msk.bf16.vlgmr.msra.gmra.mxu0 %vm476_vm2, %v3399_v40  ;;  %2847 = vmatprep.mubr.msk.bf16.mxu1 %vm476_vm2, %v3411_v45  ;;  %v392_v51 = vshll.u32 %v3396_v39, 16  ;;  %v452_v52 = vshrl.u32 %v3392_v37, 16  ;;  %v456_v53 = vshll.u32 %v3403_v43, 16  ;;  %v3430_v54 = vsel %vm359_vm1, %v382_v41, %v386_v47  ;;  %v279_v41 = vld [vmem:[%s3344_s19 + $0x74] sm:$0xf] }
  0x24   : > { %2890 = vmatpush3.bf16.msra.mxu0 %v919_v12  ;;  %2848 = vmatmul.mubr.msk.bf16.vlgmr.msra.gmra.mxu1 %vm476_vm2, %v3416_v46  ;;  %v390_v55 = vor.u32 %v388_v42, %v386_v47  ;;  %v396_v56 = vshrl.u32 %v3396_v39, 16  ;;  %v400_v57 = vshll.u32 %v3419_v49, 16  ;;  %v450_v58 = vrot.slane %v448_v50, 1 }
  0x25   : > { %3111 = vmatprep.subr.msk.bf16.mxu0 %vm519_vm0, %v3386_v33  ;;  %2835 = vmatprep.mubr.msk.bf16.mxu0 %vm476_vm2, %v3430_v54  ;;  %v394_v59 = vrot.slane %v392_v51, 1  ;;  %v458_v60 = vrot.slane %v456_v53, 1  ;;  %v460_v62 = vshrl.u32 %v3403_v43, 16  ;;  %v404_v1 = vshrl.u32 %v3419_v49, 16 }
  0x26   : > { %2860 = vmatpush3.bf16.msra.mxu1 %v697_v13  ;;  %v402_v0 = vrot.slane %v400_v57, 1  ;;  %v3449_v2 = vsel %vm359_vm1, %v446_v48, %v450_v58  ;;  %v454_v6 = vor.u32 %v452_v52, %v450_v58  ;;  %v464_v12 = vshll.u32 %v3439_v61, 16 }
  0x27   : > { %3110 = vmatprep.subr.msk.bf16.mxu1 %vm519_vm0, %v3408_v44  ;;  %v3452_v3 = vsel %vm359_vm1, %v390_v55, %v394_v59  ;;  %v398_v7 = vor.u32 %v396_v56, %v394_v59  ;;  %2851 = vmatprep.mubr.msk.bf16.mxu1 %vm476_vm2, %v3449_v2  ;;  %v462_v9 = vor.u32 %v460_v62, %v458_v60  ;;  %v408_v13 = vshll.u32 %v3443_v63, 16 }
  0x28   : > { %v3463_v15 = vsel %vm359_vm1, %v454_v6, %v458_v60  ;;  %v3468_v19 = vcombine.low %v278_v8, %v278_v8  ;;  %v468_v20 = vshrl.u32 %v3439_v61, 16  ;;  %v466_v21 = vrot.slane %v464_v12, 1 }
  0x29   : > { %v3466_v18 = vsel %vm359_vm1, %v398_v7, %v402_v0  ;;  %v410_v22 = vrot.slane %v408_v13, 1  ;;  %v412_v23 = vshrl.u32 %v3443_v63, 16  ;;  %v416_v24 = vshll.u32 %v3460_v14, 16 }
  0x2a   : > { %v406_v25 = vor.u32 %v404_v1, %v402_v0  ;;  %v472_v27 = vshll.u32 %v3468_v19, 16  ;;  %v3481_v29 = vsel %vm359_vm1, %v462_v9, %v466_v21  ;;  %v470_v31 = vor.u32 %v468_v20, %v466_v21  ;;  %v2639_v0 = vld [vmem:[%s4375_s1 + $0xc] sm:$0x3] }
  0x2b   : > { %2836 = vmatmul.mubr.msk.bf16.gmra.mxu0 %vm476_vm2, %v3452_v3  ;;  %v414_v30 = vor.u32 %v412_v23, %v410_v22  ;;  %v418_v34 = vrot.slane %v416_v24, 1  ;;  %v420_v36 = vshrl.u32 %v3460_v14, 16  ;;  %v3498_v48 = vcombine.low %v278_v8, %v279_v41 }
  0x2c   : > { %2839 = vmatprep.mubr.msk.bf16.mxu0 %vm476_vm2, %v3466_v18  ;;  %2852 = vmatmul.mubr.msk.bf16.gmra.mxu1 %vm476_vm2, %v3463_v15  ;;  %v474_v32 = vrot.slane %v472_v27, 1  ;;  %v3486_v35 = vsel %vm359_vm1, %v406_v25, %v410_v22  ;;  %v847_v50 = vrot.slane %v3347_v4, 1  ;;  %v848_v51 = vrot.slane %v3350_v5, 1 }
  0x2d   : > { %2855 = vmatprep.mubr.msk.bf16.mxu1 %vm476_vm2, %v3481_v29  ;;  %v3490_v38 = vsel %vm359_vm1, %v414_v30, %v418_v34  ;;  %v422_v47 = vor.u32 %v420_v36, %v418_v34  ;;  %v1283_v52 = vshll.u32 %v3498_v48, 16  ;;  %v850_v58 = vrot.slane %v3365_v16, 1 }
  0x2e   : > { %v475_v42 = vsel %vm359_vm1, %v470_v31, %v474_v32  ;;  %v849_v56 = vsel %vm846_vm3, %v847_v50, %v848_v51  ;;  %v852_v59 = vrot.slane %v3379_v28, 1  ;;  %v1302_v60 = vsel %vm519_vm0, %v3386_v33, 0 }
  0x2f   : > { %v3508_v53 = vsel %vm359_vm1, %v422_v47, %v3376_v26  ;;  %v3510_v55 = vrot.slane %v1283_v52, 1  ;;  %v2624_v26 = vld [vmem:[%s4375_s1 + $0xa] sm:$0x3]  ;;  %v854_v1 = vrot.slane %v3396_v39, 1  ;;  %v856_v33 = vrot.slane %v3419_v49, 1 }
  0x30   : > { %v3538_v62 = vsel %vm846_vm3, %v850_v58, %v852_v59  ;;  %v858_v8 = vrot.slane %v3443_v63, 1  ;;  %v860_v9 = vrot.slane %v3460_v14, 1  ;;  %v862_v20 = vrot.slane %v3357_v10, 1  ;;  %v2655_v52 = vld [vmem:[%s4375_s1 + $0xe] sm:$0x3] }
  0x31   : > { %v3515_v57 = vsel %vm359_vm1, %v470_v31, %v3510_v55  ;;  %v3555_v6 = vsel %vm846_vm3, %v852_v59, %v854_v1  ;;  %v3558_v7 = vsel %vm846_vm3, %v854_v1, %v856_v33  ;;  %v864_v21 = vrot.slane %v3360_v11, 1 }
  0x32   : > { %v3571_v12 = vsel %vm846_vm3, %v856_v33, %v858_v8  ;;  %v3574_v13 = vsel %vm846_vm3, %v858_v8, %v860_v9  ;;  %v872_v22 = vrot.slane %v3439_v61, 1  ;;  %v3586_v23 = vrot.slane %v3498_v48, 1 }
  0x33   : > { %2840 = vmatmul.mubr.msk.bf16.gmra.mxu0 %vm476_vm2, %v3486_v35  ;;  %v3595_v25 = vsel %vm846_vm3, %v860_v9, %v862_v20  ;;  %v3598_v27 = vsel %vm846_vm3, %v862_v20, %v864_v21  ;;  %v866_v30 = vrot.slane %v3368_v17, 1  ;;  %v868_v31 = vrot.slane %v3392_v37, 1 }
  0x34   : > { %2843 = vmatprep.mubr.msk.bf16.mxu0 %vm476_vm2, %v3490_v38  ;;  %2856 = vmatmul.mubr.msk.bf16.gmra.mxu1 %vm476_vm2, %v475_v42  ;;  %v3592_v24 = vsel %vm846_vm3, %v872_v22, %v3586_v23  ;;  %v870_v36 = vrot.slane %v3403_v43, 1  ;;  %v874_v47 = vrot.slane %v3468_v19, 1  ;;  %v2671_v19 = vld [vmem:[%s4375_s1 + $0x10] sm:$0x3] }
  0x35   : > { %2861 = vmatprep.mubr.msk.bf16.mxu1 %vm476_vm2, %v3347_v4  ;;  %v1103_v4 = vsel %vm519_vm0, %v3408_v44, 0  ;;  %v3533_v44 = vsel %vm846_vm3, %v848_v51, %v850_v58  ;;  %v3611_v32 = vsel %vm846_vm3, %v864_v21, %v866_v30  ;;  %v3614_v34 = vsel %vm846_vm3, %v866_v30, %v868_v31 }
  0x36   : > { %v3626_v41 = vsel %vm846_vm3, %v868_v31, %v870_v36  ;;  %v3629_v42 = vsel %vm846_vm3, %v870_v36, %v872_v22  ;;  %v875_v50 = vsel %vm846_vm3, %v872_v22, %v874_v47  ;;  %v1490_v51 = vsel %vm519_vm0, %v2624_v26, 0 }
  0x3b   : > { %2844 = vmatmul.mubr.msk.bf16.gmra.mxu0 %vm476_vm2, %v3508_v53 }
  0x3c   : > { %2891 = vmatprep.mubr.msk.bf16.mxu0 %vm476_vm2, %v849_v56  ;;  %2862 = vmatmul.mubr.msk.bf16.vlgmr.msra.gmra.mxu1 %vm476_vm2, %v3350_v5 }
  0x3d   : > { %2865 = vmatprep.mubr.msk.bf16.mxu1 %vm476_vm2, %v3365_v16  ;;  %2920 = vmatpush3.bf16.msra.mxu1 %v1103_v4  ;;  %v1287_v4 = vshrl.u32 %v3498_v48, 16 }
  0x3e   : > { %3112 = vmatprep.subr.msk.bf16.mxu1 %vm519_vm0, %v2624_v26 }
  0x3f   : > { %v3705_v26 = vor.u32 %v1287_v4, %v3510_v55  ;;  %v2061_v55 = vsel %vm519_vm0, %v2671_v19, 0 }
  0x43   : > { %2892 = vmatmul.mubr.msk.bf16.vlgmr.msra.gmra.mxu0 %vm476_vm2, %v3533_v44 }
  0x44   : > { %2950 = vmatpush3.bf16.msra.mxu0 %v1302_v60  ;;  %2895 = vmatprep.mubr.msk.bf16.mxu0 %vm476_vm2, %v3538_v62 }
  0x45   : > { %2866 = vmatmul.mubr.msk.bf16.gmra.mxu1 %vm476_vm2, %v3379_v28  ;;  %3113 = vmatprep.subr.msk.bf16.mxu0 %vm519_vm0, %v2639_v0 }
  0x46   : > { %2869 = vmatprep.mubr.msk.bf16.mxu1 %vm476_vm2, %v3396_v39 }
  0x4b   : > { %2896 = vmatmul.mubr.msk.bf16.gmra.mxu0 %vm476_vm2, %v3555_v6 }
  0x4c   : > { %2899 = vmatprep.mubr.msk.bf16.mxu0 %vm476_vm2, %v3558_v7 }
  0x4d   : > { %2870 = vmatmul.mubr.msk.bf16.gmra.mxu1 %vm476_vm2, %v3419_v49 }
  0x4e   : > { %2873 = vmatprep.mubr.msk.bf16.mxu1 %vm476_vm2, %v3443_v63 }
  0x53   : > { %2900 = vmatmul.mubr.msk.bf16.gmra.mxu0 %vm476_vm2, %v3571_v12 }
  0x54   : > { %2903 = vmatprep.mubr.msk.bf16.mxu0 %vm476_vm2, %v3574_v13 }
  0x55   : > { %2874 = vmatmul.mubr.msk.bf16.gmra.mxu1 %vm476_vm2, %v3460_v14 }
  0x56   : > { %2877 = vmatprep.mubr.msk.bf16.mxu1 %vm476_vm2, %v3357_v10 }
  0x5b   : > { %2904 = vmatmul.mubr.msk.bf16.gmra.mxu0 %vm476_vm2, %v3595_v25 }
  0x5c   : > { %2907 = vmatprep.mubr.msk.bf16.mxu0 %vm476_vm2, %v3598_v27 }
  0x5d   : > { %2878 = vmatmul.mubr.msk.bf16.gmra.mxu1 %vm476_vm2, %v3360_v11 }
  0x5e   : > { %2881 = vmatprep.mubr.msk.bf16.mxu1 %vm476_vm2, %v3368_v17 }
  0x63   : > { %2908 = vmatmul.mubr.msk.bf16.gmra.mxu0 %vm476_vm2, %v3611_v32 }
  0x64   : > { %2911 = vmatprep.mubr.msk.bf16.mxu0 %vm476_vm2, %v3614_v34 }
  0x65   : > { %2882 = vmatmul.mubr.msk.bf16.gmra.mxu1 %vm476_vm2, %v3392_v37 }
  0x66   : > { %2885 = vmatprep.mubr.msk.bf16.mxu1 %vm476_vm2, %v3403_v43 }
  0x6b   : > { %2912 = vmatmul.mubr.msk.bf16.gmra.mxu0 %vm476_vm2, %v3626_v41 }
  0x6c   : > { %2915 = vmatprep.mubr.msk.bf16.mxu0 %vm476_vm2, %v3629_v42 }
  0x6d   : > { %2886 = vmatmul.mubr.msk.bf16.gmra.mxu1 %vm476_vm2, %v3439_v61 }
  0x6e   : > { %2921 = vmatprep.mubr.msk.bf16.mxu1 %vm476_vm2, %v3350_v5  ;;  %v1674_v5 = vsel %vm519_vm0, %v2639_v0, 0  ;;  %v1873_v0 = vsel %vm519_vm0, %v2655_v52, 0 }
  0x73   : > { %2916 = vmatmul.mubr.msk.bf16.gmra.mxu0 %vm476_vm2, %v875_v50 }
  0x74   : > { %2951 = vmatprep.mubr.msk.bf16.mxu0 %vm476_vm2, %v3399_v40  ;;  %v280_v40 = vld [vmem:[%s3344_s19 + $0x78] sm:$0xf] }
  0x75   : > { %2922 = vmatmul.mubr.msk.bf16.vlgmr.msra.gmra.mxu1 %vm476_vm2, %v3365_v16  ;;  %v2609_v56 = vcombine.low %v280_v40, %v280_v40 }
  0x76   : > { %2925 = vmatprep.mubr.msk.bf16.mxu1 %vm476_vm2, %v3379_v28  ;;  %2980 = vmatpush3.bf16.msra.mxu1 %v1490_v51 }
  0x77   : > { %3114 = vmatprep.subr.msk.bf16.mxu1 %vm519_vm0, %v2655_v52  ;;  %v1291_v58 = vshll.u32 %v2609_v56, 16 }
  0x79   : > { %v1293_v59 = vrot.slane %v1291_v58, 1 }
  0x7b   : > { %2952 = vmatmul.mubr.msk.bf16.vlgmr.msra.gmra.mxu0 %vm476_vm2, %v3430_v54  ;;  %v1294_v60 = vsel %vm359_vm1, %v3705_v26, %v1293_v59 }
  0x7c   : > { %3010 = vmatpush3.bf16.msra.mxu0 %v1674_v5  ;;  %2955 = vmatprep.mubr.msk.bf16.mxu0 %vm476_vm2, %v3452_v3 }
  0x7d   : > { %2926 = vmatmul.mubr.msk.bf16.gmra.mxu1 %vm476_vm2, %v3396_v39  ;;  %3115 = vmatprep.subr.msk.bf16.mxu0 %vm519_vm0, %v2671_v19 }
  0x7e   : > { %2929 = vmatprep.mubr.msk.bf16.mxu1 %vm476_vm2, %v3419_v49 }
  0x83   : > { %2956 = vmatmul.mubr.msk.bf16.gmra.mxu0 %vm476_vm2, %v3466_v18 }
  0x84   : > { %2959 = vmatprep.mubr.msk.bf16.mxu0 %vm476_vm2, %v3486_v35 }
  0x85   : > { %2930 = vmatmul.mubr.msk.bf16.gmra.mxu1 %vm476_vm2, %v3443_v63 }
  0x86   : > { %2933 = vmatprep.mubr.msk.bf16.mxu1 %vm476_vm2, %v3460_v14 }
  0x8b   : > { %2960 = vmatmul.mubr.msk.bf16.gmra.mxu0 %vm476_vm2, %v3490_v38 }
  0x8c   : > { %2963 = vmatprep.mubr.msk.bf16.mxu0 %vm476_vm2, %v3508_v53 }
  0x8d   : > { %2934 = vmatmul.mubr.msk.bf16.gmra.mxu1 %vm476_vm2, %v3357_v10 }
  0x8e   : > { %2937 = vmatprep.mubr.msk.bf16.mxu1 %vm476_vm2, %v3360_v11 }
  0x93   : > { %2964 = vmatmul.mubr.msk.bf16.gmra.mxu0 %vm476_vm2, %v3411_v45 }
  0x94   : > { %2967 = vmatprep.mubr.msk.bf16.mxu0 %vm476_vm2, %v3416_v46 }
  0x95   : > { %2938 = vmatmul.mubr.msk.bf16.gmra.mxu1 %vm476_vm2, %v3368_v17 }
  0x96   : > { %2941 = vmatprep.mubr.msk.bf16.mxu1 %vm476_vm2, %v3392_v37 }
  0x9b   : > { %2968 = vmatmul.mubr.msk.bf16.gmra.mxu0 %vm476_vm2, %v3449_v2 }
  0x9c   : > { %2971 = vmatprep.mubr.msk.bf16.mxu0 %vm476_vm2, %v3463_v15 }
  0x9d   : > { %2942 = vmatmul.mubr.msk.bf16.gmra.mxu1 %vm476_vm2, %v3403_v43 }
  0x9e   : > { %2945 = vmatprep.mubr.msk.bf16.mxu1 %vm476_vm2, %v3439_v61 }
  0xa3   : > { %2972 = vmatmul.mubr.msk.bf16.gmra.mxu0 %vm476_vm2, %v3481_v29 }
  0xa4   : > { %2975 = vmatprep.mubr.msk.bf16.mxu0 %vm476_vm2, %v3515_v57 }
  0xa5   : > { %2946 = vmatmul.mubr.msk.bf16.gmra.mxu1 %vm476_vm2, %v3498_v48 }
  0xa6   : > { %2981 = vmatprep.mubr.msk.bf16.mxu1 %vm476_vm2, %v3533_v44 }
  0xab   : > { %2976 = vmatmul.mubr.msk.bf16.gmra.mxu0 %vm476_vm2, %v1294_v60 }
  0xac   : > { %3011 = vmatprep.mubr.msk.bf16.mxu0 %vm476_vm2, %v3365_v16  ;;  %v281_v16 = vld [vmem:[%s3344_s19 + $0x7c] sm:$0xf] }
  0xad   : > { %2982 = vmatmul.mubr.msk.bf16.vlgmr.msra.gmra.mxu1 %vm476_vm2, %v3538_v62 }
  0xae   : > { %2985 = vmatprep.mubr.msk.bf16.mxu1 %vm476_vm2, %v3555_v6  ;;  %3040 = vmatpush3.bf16.msra.mxu1 %v1873_v0 }
  0xb3   : > { %3012 = vmatmul.mubr.msk.bf16.vlgmr.msra.gmra.mxu0 %vm476_vm2, %v3379_v28 }
  0xb4   : > { %3070 = vmatpush3.bf16.msra.mxu0 %v2061_v55  ;;  %3015 = vmatprep.mubr.msk.bf16.mxu0 %vm476_vm2, %v3396_v39 }
  0xb5   : > { %2986 = vmatmul.mubr.msk.bf16.gmra.mxu1 %vm476_vm2, %v3558_v7 }
  0xb6   : > { %2989 = vmatprep.mubr.msk.bf16.mxu1 %vm476_vm2, %v3571_v12 }
  0xbb   : > { %3016 = vmatmul.mubr.msk.bf16.gmra.mxu0 %vm476_vm2, %v3419_v49 }
  0xbc   : > { %3019 = vmatprep.mubr.msk.bf16.mxu0 %vm476_vm2, %v3443_v63 }
  0xbd   : > { %2990 = vmatmul.mubr.msk.bf16.gmra.mxu1 %vm476_vm2, %v3574_v13 }
  0xbe   : > { %2993 = vmatprep.mubr.msk.bf16.mxu1 %vm476_vm2, %v3595_v25 }
  0xc3   : > { %3020 = vmatmul.mubr.msk.bf16.gmra.mxu0 %vm476_vm2, %v3460_v14 }
  0xc4   : > { %3023 = vmatprep.mubr.msk.bf16.mxu0 %vm476_vm2, %v3357_v10  ;;  %v1481_v10 = vrot.slane %v2609_v56, 1 }
  0xc5   : > { %2994 = vmatmul.mubr.msk.bf16.gmra.mxu1 %vm476_vm2, %v3598_v27 }
  0xc6   : > { %2997 = vmatprep.mubr.msk.bf16.mxu1 %vm476_vm2, %v3611_v32 }
  0xcb   : > { %3024 = vmatmul.mubr.msk.bf16.gmra.mxu0 %vm476_vm2, %v3360_v11  ;;  %v1482_v11 = vsel %vm846_vm3, %v3586_v23, %v1481_v10 }
  0xcc   : > { %3027 = vmatprep.mubr.msk.bf16.mxu0 %vm476_vm2, %v3368_v17  ;;  %v3772_v17 = vcombine.low %v280_v40, %v281_v16 }
  0xcd   : > { %2998 = vmatmul.mubr.msk.bf16.gmra.mxu1 %vm476_vm2, %v3614_v34 }
  0xce   : > { %3001 = vmatprep.mubr.msk.bf16.mxu1 %vm476_vm2, %v3626_v41 }
  0xd3   : > { %3028 = vmatmul.mubr.msk.bf16.gmra.mxu0 %vm476_vm2, %v3392_v37 }
  0xd4   : > { %3031 = vmatprep.mubr.msk.bf16.mxu0 %vm476_vm2, %v3403_v43 }
  0xd5   : > { %3002 = vmatmul.mubr.msk.bf16.gmra.mxu1 %vm476_vm2, %v3629_v42 }
  0xd6   : > { %3005 = vmatprep.mubr.msk.bf16.mxu1 %vm476_vm2, %v3592_v24 }
  0xdb   : > { %3032 = vmatmul.mubr.msk.bf16.gmra.mxu0 %vm476_vm2, %v3439_v61 }
  0xdc   : > { %3035 = vmatprep.mubr.msk.bf16.mxu0 %vm476_vm2, %v3498_v48 }
  0xdd   : > { %3006 = vmatmul.mubr.msk.bf16.gmra.mxu1 %vm476_vm2, %v1482_v11 }
  0xde   : > { %3041 = vmatprep.mubr.msk.bf16.mxu1 %vm476_vm2, %v3430_v54 }
  0xe3   : > { %v2833_v28 = vpop.f32.mrf.mxu0  ;;  %3036 = vmatmul.mubr.msk.bf16.gmra.mxu0 %vm476_vm2, %v3772_v17 }
  0xe4   : > { %3071 = vmatprep.mubr.msk.bf16.mxu0 %vm476_vm2, %v3538_v62  ;;  %v3778_v37 = vpop.f32.mrf.mxu1 }
  0xe5   : > { %3042 = vmatmul.mubr.msk.bf16.vlgmr.msra.gmra.mxu1 %vm476_vm2, %v3452_v3  ;;  %v557_v39 = vpop.f32.mrf.mxu0 }
  0xe6   : > { %3045 = vmatprep.mubr.msk.bf16.mxu1 %vm476_vm2, %v3466_v18  ;;  %v3784_v43 = vpop.f32.mrf.mxu1 }
  0xe7   : > { %v2834_v49 = vpop.f32.mrf.mxu0 }
  0xe8   : > { %v3786_v54 = vpop.f32.mrf.mxu1 }
  0xe9   : > { %v560_v61 = vpop.f32.mrf.mxu0 }
  0xea   : > { %v3788_v63 = vpop.f32.mrf.mxu1 }
  0xeb   : > { %v2837_v14 = vpop.f32.mrf.mxu0  ;;  %3072 = vmatmul.mubr.msk.bf16.vlgmr.msra.gmra.mxu0 %vm476_vm2, %v3555_v6 }
  0xec   : > { %3075 = vmatprep.mubr.msk.bf16.mxu0 %vm476_vm2, %v3558_v7  ;;  %v3794_v3 = vpop.f32.mrf.mxu1 }
  0xed   : > { %3046 = vmatmul.mubr.msk.bf16.gmra.mxu1 %vm476_vm2, %v3486_v35  ;;  %v573_v18 = vpop.f32.mrf.mxu0 }
  0xee   : > { %3049 = vmatprep.mubr.msk.bf16.mxu1 %vm476_vm2, %v3490_v38  ;;  %v3800_v48 = vpop.f32.mrf.mxu1 }
  0xef   : > { %v2838_v44 = vpop.f32.mrf.mxu0 }
  0xf0   : > { %v3802_v62 = vpop.f32.mrf.mxu1 }
  0xf1   : > { %v576_v1 = vpop.f32.mrf.mxu0 }
  0xf2   : > { %v3804_v33 = vpop.f32.mrf.mxu1 }
  0xf3   : > { %v2841_v6 = vpop.f32.mrf.mxu0  ;;  %3076 = vmatmul.mubr.msk.bf16.gmra.mxu0 %vm476_vm2, %v3571_v12 }
  0xf4   : > { %3079 = vmatprep.mubr.msk.bf16.mxu0 %vm476_vm2, %v3574_v13  ;;  %v3810_v35 = vpop.f32.mrf.mxu1 }
  0xf5   : > { %3050 = vmatmul.mubr.msk.bf16.gmra.mxu1 %vm476_vm2, %v3508_v53  ;;  %v3814_v38 = vpop.f32.mrf.mxu0 }
  0xf6   : > { %3053 = vmatprep.mubr.msk.bf16.mxu1 %vm476_vm2, %v3411_v45  ;;  %v3818_v7 = vpop.f32.mrf.mxu1 }
  0xf7   : > { %v3820_v8 = vpop.f32.mrf.mxu0 }
  0xf8   : > { %v3822_v9 = vpop.f32.mrf.mxu1 }
  0xf9   : > { %v3824_v12 = vpop.f32.mrf.mxu0 }
  0xfa   : > { %v3826_v20 = vpop.f32.mrf.mxu1 }
  0xfb   : > { %v3828_v13 = vpop.f32.mrf.mxu0  ;;  %3080 = vmatmul.mubr.msk.bf16.gmra.mxu0 %vm476_vm2, %v3595_v25 }
  0xfc   : > { %3083 = vmatprep.mubr.msk.bf16.mxu0 %vm476_vm2, %v3598_v27  ;;  %v2863_v53 = vpop.f32.mrf.mxu1 }
  0xfd   : > { %3054 = vmatmul.mubr.msk.bf16.gmra.mxu1 %vm476_vm2, %v3416_v46  ;;  %v3836_v45 = vpop.f32.mrf.mxu0  ;;  %v742_v21 = vadd.f32 %v2863_v53, %v2833_v28  ;;  %v1854_v46 = vshll.u32 %v3772_v17, 16 }
  0xfe   : > { %3057 = vmatprep.mubr.msk.bf16.mxu1 %vm476_vm2, %v3449_v2  ;;  %v733_v22 = vpop.f32.mrf.mxu1 }
  0xff   : > { %v3840_v30 = vpop.f32.mrf.mxu0  ;;  %v734_v50 = vadd.f32 %v733_v22, %v557_v39  ;;  %v1856_v4 = vrot.slane %v1854_v46, 1 }
 0x100   : > { %v2864_v31 = vpop.f32.mrf.mxu1 }
 0x101   : > { %v3842_v36 = vpop.f32.mrf.mxu0  ;;  %v745_v25 = vadd.f32 %v2864_v31, %v2834_v49 }
 0x102   : > { %v736_v47 = vpop.f32.mrf.mxu1 }
 0x103   : > { %v2893_v27 = vpop.f32.mrf.mxu0  ;;  %3084 = vmatmul.mubr.msk.bf16.gmra.mxu0 %vm476_vm2, %v3611_v32  ;;  %v3176_v32 = vld [vmem:[%s3344_s19 + $0x80] ss:$0 sps:$4 sm:$0xff]   ;;  %v737_v58 = vadd.f32 %v736_v47, %v560_v61  ;;  %s3241_s19 = smov [#allocation2]  }
 0x104   : > { %v3847_v51 = vadd.f32 %v2893_v27, %v742_v21  ;;  %3087 = vmatprep.mubr.msk.bf16.mxu0 %vm476_vm2, %v3614_v34  ;;  %v1862_v11 = vshll.u32 %v3176_v32, 16  ;;  %s3181_s25 = sshll.u32 %s3241_s19, 4  ;;  %s3182_s25 = int_to_ptr.vmem [resolvable:$false] %s3181_s25 }
 0x105   : > { %v2867_v2 = vpop.f32.mrf.mxu1  ;;  %3058 = vmatmul.mubr.msk.bf16.gmra.mxu1 %vm476_vm2, %v3463_v15  ;;  %v955_v52 = vpop.f32.mrf.mxu0  ;;  %v1858_v15 = vshrl.u32 %v3772_v17, 16  ;;  %s3183_s20 = scalar_lea.vmem %s3182_s25, 32  ;;  %p3184_p0 = scmp.lt.s32.totalorder %s2474_s13, %s3182_s25 }
 0x106   : > { %v758_v5 = vadd.f32 %v2867_v2, %v2837_v14  ;;  %v3853_v19 = vadd.f32 %v955_v52, %v734_v50  ;;  %3061 = vmatprep.mubr.msk.bf16.mxu1 %vm476_vm2, %v3481_v29  ;;  %v1857_v29 = vsel %vm359_vm1, %v3705_v26, %v1856_v4  ;;  %v1864_v26 = vrot.slane %v1862_v11, 1  ;;  %p3185_p1 = scmp.lt.s32.totalorder %s3183_s20, %s3177_s18 }
 0x107   : > { %v749_v40 = vpop.f32.mrf.mxu1  ;;  %v2894_v56 = vpop.f32.mrf.mxu0  ;;  %v2052_v2 = vrot.slane %v3176_v32, 1 }
 0x108   : > { %v750_v59 = vadd.f32 %v749_v40, %v573_v18  ;;  %v3858_v60 = vadd.f32 %v2894_v56, %v745_v25  ;;  %v2050_v18 = vrot.slane %v3772_v17, 1  ;;  %p3186_p2 = por %p3185_p1, %p3184_p0 }
 0x109   : > { %v2868_v34 = vpop.f32.mrf.mxu1  ;;  %v958_v0 = vpop.f32.mrf.mxu0 }
 0x10a   : > { %v761_v55 = vadd.f32 %v2868_v34, %v2838_v44  ;;  %v3860_v10 = vadd.f32 %v958_v0, %v737_v58  ;;  %p3187_p3 = pnand %p3186_p2, %p3180_p13 }
 0x10b   : > { %v752_v16 = vpop.f32.mrf.mxu1  ;;  %v2897_v28 = vpop.f32.mrf.mxu0  ;;  %3088 = vmatmul.mubr.msk.bf16.gmra.mxu0 %vm476_vm2, %v3626_v41  ;;  %v1860_v41 = vor.u32 %v1858_v15, %v1856_v4 }
 0x10c   : > { %v753_v39 = vadd.f32 %v752_v16, %v576_v1  ;;  %v3867_v49 = vadd.f32 %v2897_v28, %v758_v5  ;;  %3091 = vmatprep.mubr.msk.bf16.mxu0 %vm476_vm2, %v3629_v42 }
 0x10d   : > { %v2871_v61 = vpop.f32.mrf.mxu1  ;;  %3062 = vmatmul.mubr.msk.bf16.gmra.mxu1 %vm476_vm2, %v3515_v57  ;;  %v971_v14 = vpop.f32.mrf.mxu0  ;;  %v2051_v57 = vsel %vm846_vm3, %v3586_v23, %v2050_v18  ;;  %v1865_v47 = vsel %vm359_vm1, %v1860_v41, %v1864_v26 }
 0x10e   : > { %v774_v44 = vadd.f32 %v2871_v61, %v2841_v6  ;;  %v3874_v53 = vadd.f32 %v971_v14, %v750_v59  ;;  %3065 = vmatprep.mubr.msk.bf16.mxu1 %vm476_vm2, %v1857_v29 }
 0x10f   : > { %v765_v1 = vpop.f32.mrf.mxu1  ;;  %v2898_v21 = vpop.f32.mrf.mxu0 }
 0x110   : > { %v766_v22 = vadd.f32 %v765_v1, %v3814_v38  ;;  %v3878_v31 = vadd.f32 %v2898_v21, %v761_v55 }
 0x111   : > { %v2872_v42 = vpop.f32.mrf.mxu1  ;;  %v974_v25 = vpop.f32.mrf.mxu0 }
 0x112   : > { %v777_v17 = vadd.f32 %v2872_v42, %v3820_v8  ;;  %v3883_v6 = vadd.f32 %v974_v25, %v753_v39 }
 0x113   : > { %v768_v27 = vpop.f32.mrf.mxu1  ;;  %v2901_v46 = vpop.f32.mrf.mxu0  ;;  %3092 = vmatmul.mubr.msk.bf16.gmra.mxu0 %vm476_vm2, %v3592_v24 }
 0x114   : > { %v769_v38 = vadd.f32 %v768_v27, %v3824_v12  ;;  %v3889_v50 = vadd.f32 %v2901_v46, %v774_v44  ;;  %3095 = vmatprep.mubr.msk.bf16.mxu0 %vm476_vm2, %v2051_v57  ;;  %v2053_v12 = vsel %vm846_vm3, %v2050_v18, %v2052_v2 }
 0x115   : > { %v2875_v52 = vpop.f32.mrf.mxu1  ;;  %3066 = vmatmul.mubr.msk.bf16.gmra.mxu1 %vm476_vm2, %v1865_v47  ;;  %v987_v23 = vpop.f32.mrf.mxu0 }
 0x116   : > { %v790_v8 = vadd.f32 %v2875_v52, %v3828_v13  ;;  %v3894_v5 = vadd.f32 %v987_v23, %v766_v22 }
 0x117   : > { %v781_v40 = vpop.f32.mrf.mxu1  ;;  %v2902_v56 = vpop.f32.mrf.mxu0 }
 0x118   : > { %v782_v4 = vadd.f32 %v781_v40, %v3836_v45  ;;  %v3897_v24 = vadd.f32 %v2902_v56, %v777_v17 }
 0x119   : > { %v2876_v58 = vpop.f32.mrf.mxu1  ;;  %v990_v59 = vpop.f32.mrf.mxu0 }
 0x11a   : > { %v793_v32 = vadd.f32 %v2876_v58, %v3840_v30  ;;  %v3901_v34 = vadd.f32 %v990_v59, %v769_v38 }
 0x11b   : > { %v784_v0 = vpop.f32.mrf.mxu1  ;;  %v2905_v55 = vpop.f32.mrf.mxu0  ;;  %3096 = vmatmul.mubr.msk.bf16.gmra.mxu0 %vm476_vm2, %v2053_v12 }
 0x11c   : > { %v785_v13 = vadd.f32 %v784_v0, %v3842_v36  ;;  %v3905_v15 = vadd.f32 %v2905_v55, %v790_v8 }
 0x11d   : > { %v2879_v11 = vpop.f32.mrf.mxu1  ;;  %v1003_v45 = vpop.f32.mrf.mxu0 }
 0x11e   : > { %v806_v16 = vadd.f32 %v2879_v11, %v3778_v37  ;;  %v3908_v28 = vadd.f32 %v1003_v45, %v782_v4 }
 0x11f   : > { %v797_v29 = vpop.f32.mrf.mxu1  ;;  %v2906_v39 = vpop.f32.mrf.mxu0 }
 0x120   : > { %v798_v30 = vadd.f32 %v797_v29, %v3784_v43  ;;  %v3911_v61 = vadd.f32 %v2906_v39, %v793_v32 }
 0x121   : > { %v2880_v14 = vpop.f32.mrf.mxu1  ;;  %v1006_v18 = vpop.f32.mrf.mxu0 }
 0x122   : > { %v809_v44 = vadd.f32 %v2880_v14, %v3786_v54  ;;  %v3914_v41 = vadd.f32 %v1006_v18, %v785_v13 }
 0x123   : > { %v800_v36 = vpop.f32.mrf.mxu1  ;;  %v2909_v26 = vpop.f32.mrf.mxu0 }
 0x124   : > { %v801_v1 = vadd.f32 %v800_v36, %v3788_v63  ;;  %v3917_v21 = vadd.f32 %v2909_v26, %v806_v16 }
 0x125   : > { %v2883_v37 = vpop.f32.mrf.mxu1  ;;  %v1019_v22 = vpop.f32.mrf.mxu0 }
 0x126   : > { %v822_v42 = vadd.f32 %v2883_v37, %v3794_v3  ;;  %v3920_v25 = vadd.f32 %v1019_v22, %v798_v30 }
 0x127   : > { %v813_v43 = vpop.f32.mrf.mxu1  ;;  %v2910_v57 = vpop.f32.mrf.mxu0 }
 0x128   : > { %v814_v17 = vadd.f32 %v813_v43, %v3800_v48  ;;  %v3923_v47 = vadd.f32 %v2910_v57, %v809_v44 }
 0x129   : > { %v2884_v54 = vpop.f32.mrf.mxu1  ;;  %v1022_v27 = vpop.f32.mrf.mxu0 }
 0x12a   : > { %v825_v46 = vadd.f32 %v2884_v54, %v3802_v62  ;;  %v3926_v38 = vadd.f32 %v1022_v27, %v801_v1 }
 0x12b   : > { %v816_v63 = vpop.f32.mrf.mxu1  ;;  %v2913_v2 = vpop.f32.mrf.mxu0 }
 0x12c   : > { %v817_v52 = vadd.f32 %v816_v63, %v3804_v33  ;;  %v3929_v23 = vadd.f32 %v2913_v2, %v822_v42 }
 0x12d   : > { %v2887_v3 = vpop.f32.mrf.mxu1  ;;  %v1035_v8 = vpop.f32.mrf.mxu0 }
 0x12e   : > { %v838_v40 = vadd.f32 %v2887_v3, %v3810_v35  ;;  %v3932_v56 = vadd.f32 %v1035_v8, %v814_v17 }
 0x12f   : > { %v829_v48 = vpop.f32.mrf.mxu1  ;;  %v2914_v4 = vpop.f32.mrf.mxu0 }
 0x130   : > { %v830_v12 = vadd.f32 %v829_v48, %v3818_v7  ;;  %v3935_v58 = vadd.f32 %v2914_v4, %v825_v46 }
 0x131   : > { %v2888_v62 = vpop.f32.mrf.mxu1  ;;  %v1038_v59 = vpop.f32.mrf.mxu0 }
 0x132   : > { %v841_v32 = vadd.f32 %v2888_v62, %v3822_v9  ;;  %v3938_v0 = vadd.f32 %v1038_v59, %v817_v52 }
 0x133   : > { %v832_v33 = vpop.f32.mrf.mxu1  ;;  %v2917_v55 = vpop.f32.mrf.mxu0 }
 0x134   : > { %v833_v13 = vadd.f32 %v832_v33, %v3826_v20  ;;  %v3941_v11 = vadd.f32 %v2917_v55, %v838_v40 }
 0x135   : > { %v2923_v35 = vpop.f32.mrf.mxu1  ;;  %v1051_v45 = vpop.f32.mrf.mxu0 }
 0x136   : > { %v1252_v16 = vadd.f32 %v2923_v35, %v3847_v51  ;;  %v3944_v29 = vadd.f32 %v1051_v45, %v830_v12 }
 0x137   : > { %v1139_v7 = vpop.f32.mrf.mxu1  ;;  %v2918_v39 = vpop.f32.mrf.mxu0 }
 0x138   : > { %v1250_v30 = vadd.f32 %v1139_v7, %v3853_v19  ;;  %v3947_v14 = vadd.f32 %v2918_v39, %v841_v32 }
 0x139   : > { %v2924_v9 = vpop.f32.mrf.mxu1  ;;  %v1054_v18 = vpop.f32.mrf.mxu0 }
 0x13a   : > { %v1253_v44 = vadd.f32 %v2924_v9, %v3858_v60  ;;  %v3950_v36 = vadd.f32 %v1054_v18, %v833_v13 }
 0x13b   : > { %v1142_v20 = vpop.f32.mrf.mxu1  ;;  %v2953_v26 = vpop.f32.mrf.mxu0 }
 0x13c   : > { %v1251_v1 = vadd.f32 %v1142_v20, %v3860_v10  ;;  %v3953_v37 = vadd.f32 %v2953_v26, %v1252_v16 }
 0x13d   : > { %v2927_v51 = vpop.f32.mrf.mxu1  ;;  %v1338_v22 = vpop.f32.mrf.mxu0 }
 0x13e   : > { %v1256_v42 = vadd.f32 %v2927_v51, %v3867_v49  ;;  %v3956_v43 = vadd.f32 %v1338_v22, %v1250_v30  ;;  %v4381_v30 = vmov 0.0  }
 0x13f   : > { %v1155_v19 = vpop.f32.mrf.mxu1  ;;  %v2954_v57 = vpop.f32.mrf.mxu0  ;;  %2313 = vmatprep.subr.mxu1 %v4381_v30 }
 0x140   : > { %v1254_v17 = vadd.f32 %v1155_v19, %v3874_v53  ;;  %v3959_v54 = vadd.f32 %v2954_v57, %v1253_v44 }
 0x141   : > { %v2928_v60 = vpop.f32.mrf.mxu1  ;;  %v1341_v27 = vpop.f32.mrf.mxu0 }
 0x142   : > { %v1257_v46 = vadd.f32 %v2928_v60, %v3878_v31  ;;  %v3962_v63 = vadd.f32 %v1341_v27, %v1251_v1 }
 0x143   : > { %v1158_v10 = vpop.f32.mrf.mxu1  ;;  %v2957_v2 = vpop.f32.mrf.mxu0 }
 0x144   : > { %v1255_v52 = vadd.f32 %v1158_v10, %v3883_v6  ;;  %v3965_v3 = vadd.f32 %v2957_v2, %v1256_v42 }
 0x145   : > { %v2931_v49 = vpop.f32.mrf.mxu1  ;;  %v1354_v8 = vpop.f32.mrf.mxu0 }
 0x146   : > { %v1260_v40 = vadd.f32 %v2931_v49, %v3889_v50  ;;  %v3968_v48 = vadd.f32 %v1354_v8, %v1254_v17 }
 0x147   : > { %v1171_v53 = vpop.f32.mrf.mxu1  ;;  %v2958_v4 = vpop.f32.mrf.mxu0 }
 0x148   : > { %v1258_v12 = vadd.f32 %v1171_v53, %v3894_v5  ;;  %v3971_v62 = vadd.f32 %v2958_v4, %v1257_v46 }
 0x149   : > { %v2932_v31 = vpop.f32.mrf.mxu1  ;;  %v1357_v59 = vpop.f32.mrf.mxu0 }
 0x14a   : > { %v1261_v32 = vadd.f32 %v2932_v31, %v3897_v24  ;;  %v3974_v33 = vadd.f32 %v1357_v59, %v1255_v52 }
 0x14b   : > { %v1174_v6 = vpop.f32.mrf.mxu1  ;;  %v2961_v55 = vpop.f32.mrf.mxu0 }
 0x14c   : > { %v1259_v13 = vadd.f32 %v1174_v6, %v3901_v34  ;;  %v3977_v35 = vadd.f32 %v2961_v55, %v1260_v40 }
 0x14d   : > { %v2935_v50 = vpop.f32.mrf.mxu1  ;;  %v1370_v45 = vpop.f32.mrf.mxu0 }
 0x14e   : > { %v1264_v16 = vadd.f32 %v2935_v50, %v3905_v15  ;;  %v3980_v7 = vadd.f32 %v1370_v45, %v1258_v12 }
 0x14f   : > { %v1187_v5 = vpop.f32.mrf.mxu1  ;;  %v2962_v39 = vpop.f32.mrf.mxu0 }
 0x150   : > { %v1262_v24 = vadd.f32 %v1187_v5, %v3908_v28  ;;  %v3984_v9 = vadd.f32 %v2962_v39, %v1261_v32 }
 0x151   : > { %v2936_v18 = vpop.f32.mrf.mxu1  ;;  %v1373_v44 = vpop.f32.mrf.mxu0 }
 0x152   : > { %v1265_v34 = vadd.f32 %v2936_v18, %v3911_v61  ;;  %v3987_v20 = vadd.f32 %v1373_v44, %v1259_v13 }
 0x153   : > { %v1190_v26 = vpop.f32.mrf.mxu1  ;;  %v2965_v1 = vpop.f32.mrf.mxu0 }
 0x154   : > { %v1263_v15 = vadd.f32 %v1190_v26, %v3914_v41  ;;  %v3990_v51 = vadd.f32 %v2965_v1, %v1264_v16 }
 0x155   : > { %v2939_v22 = vpop.f32.mrf.mxu1  ;;  %v1386_v42 = vpop.f32.mrf.mxu0 }
 0x156   : > { %v1268_v19 = vadd.f32 %v2939_v22, %v3917_v21  ;;  %v3993_v57 = vadd.f32 %v1386_v42, %v1262_v24 }
 0x157   : > { %v1203_v28 = vpop.f32.mrf.mxu1  ;;  %v2966_v17 = vpop.f32.mrf.mxu0 }
 0x158   : > { %v1266_v60 = vadd.f32 %v1203_v28, %v3920_v25  ;;  %v3996_v27 = vadd.f32 %v2966_v17, %v1265_v34 }
 0x159   : > { %v2940_v61 = vpop.f32.mrf.mxu1  ;;  %v1389_v46 = vpop.f32.mrf.mxu0 }
 0x15a   : > { %v1269_v10 = vadd.f32 %v2940_v61, %v3923_v47  ;;  %v3999_v2 = vadd.f32 %v1389_v46, %v1263_v15 }
 0x15b   : > { %v1206_v41 = vpop.f32.mrf.mxu1  ;;  %v2969_v52 = vpop.f32.mrf.mxu0 }
 0x15c   : > { %v1267_v49 = vadd.f32 %v1206_v41, %v3926_v38  ;;  %v4002_v8 = vadd.f32 %v2969_v52, %v1268_v19 }
 0x15d   : > { %v2943_v21 = vpop.f32.mrf.mxu1  ;;  %v1402_v40 = vpop.f32.mrf.mxu0 }
 0x15e   : > { %v1272_v53 = vadd.f32 %v2943_v21, %v3929_v23  ;;  %v4005_v4 = vadd.f32 %v1402_v40, %v1266_v60 }
 0x15f   : > { %v1219_v25 = vpop.f32.mrf.mxu1  ;;  %v2970_v12 = vpop.f32.mrf.mxu0 }
 0x160   : > { %v1270_v31 = vadd.f32 %v1219_v25, %v3932_v56  ;;  %v4008_v59 = vadd.f32 %v2970_v12, %v1269_v10 }
 0x161   : > { %v2944_v47 = vpop.f32.mrf.mxu1  ;;  %v1405_v32 = vpop.f32.mrf.mxu0 }
 0x162   : > { %v1273_v6 = vadd.f32 %v2944_v47, %v3935_v58  ;;  %v4011_v55 = vadd.f32 %v1405_v32, %v1267_v49 }
 0x163   : > { %v1222_v38 = vpop.f32.mrf.mxu1  ;;  %v2973_v13 = vpop.f32.mrf.mxu0 }
 0x164   : > { %v1271_v50 = vadd.f32 %v1222_v38, %v3938_v0  ;;  %v4014_v45 = vadd.f32 %v2973_v13, %v1272_v53 }
 0x165   : > { %v2947_v23 = vpop.f32.mrf.mxu1  ;;  %v1418_v16 = vpop.f32.mrf.mxu0 }
 0x166   : > { %v1276_v5 = vadd.f32 %v2947_v23, %v3941_v11  ;;  %v4017_v39 = vadd.f32 %v1418_v16, %v1270_v31 }
 0x167   : > { %v1235_v56 = vpop.f32.mrf.mxu1  ;;  %v2974_v24 = vpop.f32.mrf.mxu0 }
 0x168   : > { %v1274_v18 = vadd.f32 %v1235_v56, %v3944_v29  ;;  %v4020_v44 = vadd.f32 %v2974_v24, %v1273_v6 }
 0x169   : > { %v2948_v58 = vpop.f32.mrf.mxu1  ;;  %v1421_v34 = vpop.f32.mrf.mxu0 }
 0x16a   : > { %v1277_v26 = vadd.f32 %v2948_v58, %v3947_v14  ;;  %v4023_v1 = vadd.f32 %v1421_v34, %v1271_v50 }
 0x16b   : > { %v1238_v0 = vpop.f32.mrf.mxu1  ;;  %v2977_v15 = vpop.f32.mrf.mxu0 }
 0x16c   : > { %v1275_v22 = vadd.f32 %v1238_v0, %v3950_v36  ;;  %v4026_v42 = vadd.f32 %v2977_v15, %v1276_v5 }
 0x16d   : > { %v2983_v11 = vpop.f32.mrf.mxu1  ;;  %v1434_v19 = vpop.f32.mrf.mxu0 }
 0x16e   : > { %v1639_v28 = vadd.f32 %v2983_v11, %v3953_v37  ;;  %v4029_v17 = vadd.f32 %v1434_v19, %v1274_v18 }
 0x16f   : > { %v1526_v29 = vpop.f32.mrf.mxu1  ;;  %v2978_v60 = vpop.f32.mrf.mxu0 }
 0x170   : > { %v1637_v61 = vadd.f32 %v1526_v29, %v3956_v43  ;;  %v4032_v46 = vadd.f32 %v2978_v60, %v1277_v26 }
 0x171   : > { %v2984_v14 = vpop.f32.mrf.mxu1  ;;  %v1437_v10 = vpop.f32.mrf.mxu0 }
 0x172   : > { %v1640_v41 = vadd.f32 %v2984_v14, %v3959_v54  ;;  %v4035_v52 = vadd.f32 %v1437_v10, %v1275_v22 }
 0x173   : > { %v1529_v36 = vpop.f32.mrf.mxu1  ;;  %v3013_v49 = vpop.f32.mrf.mxu0 }
 0x174   : > { %4385 = vst [vmem:[#allocation5_spill] sm:$0xff] %v4035_v52  ;;  %v1638_v21 = vadd.f32 %v1529_v36, %v3962_v63  ;;  %v4038_v40 = vadd.f32 %v3013_v49, %v1639_v28 }
 0x175   : > { %v2987_v37 = vpop.f32.mrf.mxu1  ;;  %v1710_v53 = vpop.f32.mrf.mxu0 }
 0x176   : > { %v1643_v25 = vadd.f32 %v2987_v37, %v3965_v3  ;;  %v4041_v12 = vadd.f32 %v1710_v53, %v1637_v61 }
 0x177   : > { %v1542_v43 = vpop.f32.mrf.mxu1  ;;  %v3014_v31 = vpop.f32.mrf.mxu0 }
 0x178   : > { %v1641_v47 = vadd.f32 %v1542_v43, %v3968_v48  ;;  %v4044_v32 = vadd.f32 %v3014_v31, %v1640_v41  ;;  %v2301_v48 = vlaneseq }
 0x179   : > { %v2988_v54 = vpop.f32.mrf.mxu1  ;;  %v1713_v6 = vpop.f32.mrf.mxu0 }
 0x17a   : > { %v1644_v38 = vadd.f32 %v2988_v54, %v3971_v62  ;;  %v4047_v13 = vadd.f32 %v1713_v6, %v1638_v21  ;;  %v2302_v26 = vshrl.u32 %v2301_v48, 7 }
 0x17b   : > { %v1545_v63 = vpop.f32.mrf.mxu1  ;;  %v3017_v50 = vpop.f32.mrf.mxu0 }
 0x17c   : > { %v1642_v23 = vadd.f32 %v1545_v63, %v3974_v33  ;;  %v4050_v16 = vadd.f32 %v3017_v50, %v1643_v25  ;;  %v2307_v11 = vsub.s32 1, %v2302_v26  ;;  %v2303_v29 = vsub.s32 0, %v2302_v26 }
 0x17d   : > { %v2991_v3 = vpop.f32.mrf.mxu1  ;;  %v1726_v5 = vpop.f32.mrf.mxu0 }
 0x17e   : > { %v1647_v56 = vadd.f32 %v2991_v3, %v3977_v35  ;;  %v4053_v24 = vadd.f32 %v1726_v5, %v1641_v47  ;;  %v2299_v35 = vld [vmem:[%s4377_s3] sm:$0x3] }
 0x17f   : > { %v1558_v18 = vpop.f32.mrf.mxu1  ;;  %v3018_v58 = vpop.f32.mrf.mxu0  ;;  %v2308_v61 = vrot.slane %v2299_v35, %v2307_v11 }
 0x180   : > { %v1645_v34 = vadd.f32 %v1558_v18, %v3980_v7  ;;  %v4056_v62 = vadd.f32 %v3018_v58, %v1644_v38 }
 0x181   : > { %v2992_v0 = vpop.f32.mrf.mxu1  ;;  %v1729_v15 = vpop.f32.mrf.mxu0  ;;  %2687 = vmatprep.mubr.msk.f32.mxu1 %vm2310_vm4, %v2308_v61 }
 0x182   : > { %v1648_v33 = vadd.f32 %v2992_v0, %v3984_v9  ;;  %v4059_v22 = vadd.f32 %v1729_v15, %v1642_v23  ;;  %v4069_v9 = vrot.slane %v2299_v35, %v2303_v29 }
 0x183   : > { %v1561_v19 = vpop.f32.mrf.mxu1  ;;  %v3021_v28 = vpop.f32.mrf.mxu0 }
 0x184   : > { %v1646_v60 = vadd.f32 %v1561_v19, %v3987_v20  ;;  %v4065_v7 = vadd.f32 %v3021_v28, %v1647_v56  ;;  %4386 = vst [vmem:[#allocation6_spill] sm:$0xff] %v4069_v9 }
 0x185   : > { %v4067_v14 = vpop.f32.mrf.mxu1  ;;  %v1742_v10 = vpop.f32.mrf.mxu0 }
 0x186   : > { %v4071_v41 = vadd.f32 %v1742_v10, %v1645_v34 }
 0x187   : > { %v4073_v36 = vpop.f32.mrf.mxu1  ;;  %v3022_v49 = vpop.f32.mrf.mxu0 }
 0x188   : > { %v4075_v21 = vadd.f32 %v3022_v49, %v1648_v33 }
 0x189   : > { %v4077_v37 = vpop.f32.mrf.mxu1  ;;  %v1745_v20 = vpop.f32.mrf.mxu0 }
 0x18a   : > { %v4079_v53 = vadd.f32 %v1745_v20, %v1646_v60 }
 0x18b   : > { %v4081_v25 = vpop.f32.mrf.mxu1  ;;  %v4083_v43 = vpop.f32.mrf.mxu0 }
 0x18d   : > { %v2999_v31 = vpop.f32.mrf.mxu1  ;;  %v4085_v47 = vpop.f32.mrf.mxu0 }
 0x18e   : > { %v1655_v54 = vadd.f32 %v2999_v31, %v4002_v8 }
 0x18f   : > { %v1590_v6 = vpop.f32.mrf.mxu1  ;;  %v4088_v38 = vpop.f32.mrf.mxu0 }
 0x190   : > { %v1653_v63 = vadd.f32 %v1590_v6, %v4005_v4 }
 0x191   : > { %v3000_v50 = vpop.f32.mrf.mxu1  ;;  %v4091_v23 = vpop.f32.mrf.mxu0 }
 0x192   : > { %v1656_v3 = vadd.f32 %v3000_v50, %v4008_v59 }
 0x193   : > { %v1593_v5 = vpop.f32.mrf.mxu1  ;;  %v3029_v56 = vpop.f32.mrf.mxu0 }
 0x194   : > { %v1654_v48 = vadd.f32 %v1593_v5, %v4011_v55  ;;  %v4095_v18 = vadd.f32 %v3029_v56, %v1655_v54 }
 0x195   : > { %v3003_v58 = vpop.f32.mrf.mxu1  ;;  %v1774_v34 = vpop.f32.mrf.mxu0 }
 0x196   : > { %4387 = vst [vmem:[#allocation7_spill] sm:$0xff] %v4095_v18  ;;  %v1659_v8 = vadd.f32 %v3003_v58, %v4014_v45  ;;  %v4098_v26 = vadd.f32 %v1774_v34, %v1653_v63 }
 0x197   : > { %v1606_v0 = vpop.f32.mrf.mxu1  ;;  %v3030_v15 = vpop.f32.mrf.mxu0 }
 0x198   : > { %4388 = vst [vmem:[#allocation8_spill] sm:$0xff] %v4098_v26  ;;  %v1657_v4 = vadd.f32 %v1606_v0, %v4017_v39  ;;  %v4101_v33 = vadd.f32 %v3030_v15, %v1656_v3 }
 0x199   : > { %v3004_v11 = vpop.f32.mrf.mxu1  ;;  %v1777_v59 = vpop.f32.mrf.mxu0 }
 0x19a   : > { %4389 = vst [vmem:[#allocation9_spill] sm:$0xff] %v4101_v33  ;;  %v1660_v19 = vadd.f32 %v3004_v11, %v4020_v44  ;;  %v4104_v28 = vadd.f32 %v1777_v59, %v1654_v48 }
 0x19b   : > { %v1609_v55 = vpop.f32.mrf.mxu1  ;;  %v3033_v35 = vpop.f32.mrf.mxu0 }
 0x19c   : > { %4390 = vst [vmem:[#allocation10_spill] sm:$0xff] %v4104_v28  ;;  %v1658_v29 = vadd.f32 %v1609_v55, %v4023_v1  ;;  %v4107_v60 = vadd.f32 %v3033_v35, %v1659_v8  ;;  %v1651_v28 = vadd.f32 %v4067_v14, %v3990_v51 }
 0x19d   : > { %v3007_v45 = vpop.f32.mrf.mxu1  ;;  %v1790_v61 = vpop.f32.mrf.mxu0 }
 0x19e   : > { %4391 = vst [vmem:[#allocation11_spill] sm:$0xff] %v4107_v60  ;;  %v1663_v10 = vadd.f32 %v3007_v45, %v4026_v42  ;;  %v4110_v49 = vadd.f32 %v1790_v61, %v1657_v4 }
 0x19f   : > { %v1622_v39 = vpop.f32.mrf.mxu1  ;;  %v3034_v20 = vpop.f32.mrf.mxu0 }
 0x1a0   : > { %4392 = vst [vmem:[#allocation12_spill] sm:$0xff] %v4110_v49  ;;  %v1661_v31 = vadd.f32 %v1622_v39, %v4029_v17  ;;  %v4113_v54 = vadd.f32 %v3034_v20, %v1660_v19  ;;  %v1652_v49 = vadd.f32 %v4077_v37, %v3996_v27 }
 0x1a1   : > { %v4115_v44 = vpop.f32.mrf.mxu1  ;;  %v1793_v6 = vpop.f32.mrf.mxu0 }
 0x1a2   : > { %4393 = vst [vmem:[#allocation13_spill] sm:$0xff] %v4113_v54  ;;  %v4117_v63 = vadd.f32 %v1793_v6, %v1658_v29 }
 0x1a3   : > { %v4119_v1 = vpop.f32.mrf.mxu1  ;;  %v3037_v50 = vpop.f32.mrf.mxu0 }
 0x1a4   : > { %4394 = vst [vmem:[#allocation14_spill] sm:$0xff] %v4117_v63  ;;  %4395 = vst [vmem:[#allocation15_spill] sm:$0xff] %v4119_v1  ;;  %v4121_v3 = vadd.f32 %v3037_v50, %v1663_v10  ;;  %v1835_v63 = vadd.f32 %v4083_v43, %v1651_v28 }
 0x1a5   : > { %v4123_v5 = vpop.f32.mrf.mxu1  ;;  %v1806_v42 = vpop.f32.mrf.mxu0 }
 0x1a6   : > { %4396 = vst [vmem:[#allocation16_spill] sm:$0xff] %v4121_v3  ;;  %v4125_v56 = vadd.f32 %v1806_v42, %v1661_v31  ;;  %v1650_v3 = vadd.f32 %v4081_v25, %v3999_v2  ;;  %v4180_v2 = vld [vmem:[%s4376_s2] ss:$0 sm:$0xff] }
 0x1a7   : > { %v4127_v48 = vpop.f32.mrf.mxu1  ;;  %v4129_v17 = vpop.f32.mrf.mxu0 }
 0x1a8   : > { %4397 = vst [vmem:[#allocation17_spill] sm:$0xff] %v4125_v56  ;;  %v1649_v56 = vadd.f32 %v4073_v36, %v3993_v57  ;;  %v1834_v27 = vadd.f32 %v4091_v23, %v1650_v3 }
 0x1a9   : > { %v4131_v58 = vpop.f32.mrf.mxu1  ;;  %v4133_v34 = vpop.f32.mrf.mxu0 }
 0x1aa   : > { %4398 = vst [vmem:[#allocation18_spill] sm:$0xff] %v4133_v34  ;;  %v1836_v34 = vadd.f32 %v4088_v38, %v1652_v49  ;;  %v1833_v14 = vadd.f32 %v4085_v47, %v1649_v56 }
 0x1ab   : > { %v4135_v8 = vpop.f32.mrf.mxu1  ;;  %v4137_v0 = vpop.f32.mrf.mxu0 }
 0x1ad   : > { %v4139_v15 = vpop.f32.mrf.mxu1  ;;  %v4141_v4 = vpop.f32.mrf.mxu0 }
 0x1ae   : > { %4399 = vst [vmem:[#allocation19_spill] sm:$0xff] %v4141_v4 }
 0x1af   : > { %v4143_v11 = vpop.f32.mrf.mxu1  ;;  %v4145_v59 = vpop.f32.mrf.mxu0 }
 0x1b1   : > { %v4147_v19 = vpop.f32.mrf.mxu1  ;;  %v4149_v55 = vpop.f32.mrf.mxu0 }
 0x1b2   : > { %4400 = vst [vmem:[#allocation20_spill] sm:$0xff] %v4149_v55 }
 0x1b3   : > { %v4151_v35 = vpop.f32.mrf.mxu1  ;;  %v4153_v29 = vpop.f32.mrf.mxu0 }
 0x1b5   : > { %v3051_v45 = vpop.f32.mrf.mxu1  ;;  %v4155_v61 = vpop.f32.mrf.mxu0 }
 0x1b7   : > { %v1941_v10 = vpop.f32.mrf.mxu1  ;;  %v4157_v39 = vpop.f32.mrf.mxu0 }
 0x1b9   : > { %v3052_v20 = vpop.f32.mrf.mxu1  ;;  %v4159_v31 = vpop.f32.mrf.mxu0 }
 0x1ba   : > { %v2031_v25 = vadd.f32 %v3052_v20, %v4075_v21 }
 0x1bb   : > { %v1944_v6 = vpop.f32.mrf.mxu1  ;;  %v3081_v50 = vpop.f32.mrf.mxu0 }
 0x1bd   : > { %v3055_v42 = vpop.f32.mrf.mxu1  ;;  %v2129_v30 = vpop.f32.mrf.mxu0 }
 0x1be   : > { %v2034_v4 = vadd.f32 %v3055_v42, %v1835_v63 }
 0x1bf   : > { %v1957_v9 = vpop.f32.mrf.mxu1  ;;  %v3082_v26 = vpop.f32.mrf.mxu0 }
 0x1c0   : > { %v2032_v55 = vadd.f32 %v1957_v9, %v1833_v14 }
 0x1c1   : > { %v3056_v18 = vpop.f32.mrf.mxu1  ;;  %v2132_v33 = vpop.f32.mrf.mxu0 }
 0x1c2   : > { %v2035_v37 = vadd.f32 %v3056_v18, %v1836_v34 }
 0x1c3   : > { %v1960_v60 = vpop.f32.mrf.mxu1  ;;  %v3085_v54 = vpop.f32.mrf.mxu0 }
 0x1c4   : > { %v2222_v43 = vadd.f32 %v3085_v54, %v2034_v4  ;;  %v2033_v57 = vadd.f32 %v1960_v60, %v1834_v27  ;;  %v2219_v60 = vadd.f32 %v3082_v26, %v2031_v25  ;;  %v2029_v4 = vadd.f32 %v1944_v6, %v4079_v53 }
 0x1c5   : > { %v4171_v1 = vpop.f32.mrf.mxu1  ;;  %v2145_v51 = vpop.f32.mrf.mxu0  ;;  %v2028_v26 = vadd.f32 %v1941_v10, %v4071_v41  ;;  %v2027_v6 = vadd.f32 %v4147_v19, %v4056_v62 }
 0x1c6   : > { %v2257_v23 = vadd.f32 %v4180_v2, %v2222_v43  ;;  %v2220_v18 = vadd.f32 %v2145_v51, %v2032_v55  ;;  %v2217_v27 = vadd.f32 %v2132_v33, %v2029_v4  ;;  %v2026_v33 = vadd.f32 %v4139_v15, %v4050_v16 }
 0x1c7   : > { %v4175_v28 = vpop.f32.mrf.mxu1  ;;  %v3086_v52 = vpop.f32.mrf.mxu0  ;;  %v2215_v25 = vadd.f32 %v4157_v39, %v2027_v6  ;;  %v2024_v39 = vadd.f32 %v4143_v11, %v4053_v24 }
 0x1c8   : > { %v2223_v36 = vadd.f32 %v3086_v52, %v2035_v37  ;;  %v2030_v52 = vadd.f32 %v3051_v45, %v4065_v7  ;;  %v2285_v20 = vmax.f32 %v2257_v23, 0.0  ;;  %v2255_v42 = vadd.f32 %v4180_v2, %v2220_v18 }
 0x1c9   : > { %v4183_v38 = vpop.f32.mrf.mxu1  ;;  %v2148_v47 = vpop.f32.mrf.mxu0  ;;  %v4401_v7 = vmov 0.0   ;;  %v2254_v45 = vadd.f32 %v4180_v2, %v2219_v60  ;;  %v2252_v23 = vadd.f32 %v4180_v2, %v2217_v27  ;;  %v2214_v19 = vadd.f32 %v4153_v29, %v2026_v33 }
 0x1ca   : > { %v2258_v49 = vadd.f32 %v4180_v2, %v2223_v36  ;;  %v2221_v54 = vadd.f32 %v2148_v47, %v2033_v57  ;;  %v2218_v55 = vadd.f32 %v3081_v50, %v2030_v52  ;;  %v2216_v57 = vadd.f32 %v2129_v30, %v2028_v26 }
 0x1cb   : > { %v4187_v63 = vpop.f32.mrf.mxu1  ;;  %v4189_v9 = vpop.f32.mrf.mxu0  ;;  %v2283_v36 = vmax.f32 %v2255_v42, 0.0  ;;  %v2282_v47 = vmax.f32 %v2254_v45, 0.0  ;;  %v2025_v30 = vadd.f32 %v4151_v35, %v4059_v22  ;;  %v2280_v60 = vmax.f32 %v2252_v23, 0.0  ;;  %v4402_v45 = vld [vmem:[#allocation20_spill] sm:$0xff] }
 0x1cc   : > { %v2286_v3 = vmax.f32 %v2258_v49, 0.0  ;;  %v2256_v56 = vadd.f32 %v4180_v2, %v2221_v54  ;;  %v2253_v50 = vadd.f32 %v4180_v2, %v2218_v55  ;;  %v2251_v49 = vadd.f32 %v4180_v2, %v2216_v57 }
 0x1cd   : > { %v4193_v21 = vpop.f32.mrf.mxu1  ;;  %v4195_v34 = vpop.f32.mrf.mxu0  ;;  %v2250_v54 = vadd.f32 %v4180_v2, %v2215_v25  ;;  %v2213_v52 = vadd.f32 %v4159_v31, %v2025_v30  ;;  %v2023_v35 = vadd.f32 %v4131_v58, %v4044_v32  ;;  %v2249_v29 = vadd.f32 %v4180_v2, %v2214_v19  ;;  %v4407_v30 = vld [vmem:[#allocation16_spill] sm:$0xff] }
 0x1ce   : > { %2314 = vmatpush1.msra.mxu1 %v2286_v3  ;;  %v2284_v37 = vmax.f32 %v2256_v56, 0.0  ;;  %v2281_v18 = vmax.f32 %v2253_v50, 0.0  ;;  %v2212_v3 = vadd.f32 %v4155_v61, %v2024_v39  ;;  %v2279_v56 = vmax.f32 %v2251_v49, 0.0 }
 0x1cf   : > { %v4199_v51 = vpop.f32.mrf.mxu1  ;;  %v4201_v14 = vpop.f32.mrf.mxu0  ;;  %2315 = vmatprep.subr.mxu1 %v4401_v7  ;;  %v2022_v31 = vadd.f32 %v4123_v5, %v4038_v40  ;;  %v2211_v4 = vadd.f32 %v4145_v59, %v2023_v35  ;;  %v2278_v55 = vmax.f32 %v2250_v54, 0.0  ;;  %v1664_v32 = vadd.f32 %v4115_v44, %v4032_v46 }
 0x1d0   : > { %2316 = vmatpush1.msra.mxu1 %v2285_v20  ;;  %v2248_v20 = vadd.f32 %v4180_v2, %v2213_v52  ;;  %v2021_v61 = vadd.f32 %v4135_v8, %v4047_v13  ;;  %v2277_v26 = vmax.f32 %v2249_v29, 0.0  ;;  %v2247_v40 = vadd.f32 %v4180_v2, %v2212_v3  ;;  %v4403_v13 = vld [vmem:[#allocation5_spill] sm:$0xff]  ;;  %v4404_v8 = vld [vmem:[#allocation15_spill] sm:$0xff] }
 0x1d1   : > { %v4206_v43 = vpop.f32.mrf.mxu1  ;;  %v4208_v53 = vpop.f32.mrf.mxu0  ;;  %2317 = vmatprep.subr.mxu1 %v4401_v7  ;;  %v2210_v42 = vadd.f32 %v4137_v0, %v2022_v31  ;;  %v2020_v5 = vadd.f32 %v4127_v48, %v4041_v12  ;;  %v1848_v46 = vadd.f32 %v4129_v17, %v1664_v32  ;;  %v2246_v44 = vadd.f32 %v4180_v2, %v2211_v4  ;;  %v4405_v12 = vld [vmem:[#allocation19_spill] sm:$0xff]  ;;  %v4406_v17 = vld [vmem:[#allocation18_spill] sm:$0xff]  ;;  %v4408_v29 = vld [vmem:[#allocation17_spill] sm:$0xff] }
 0x1d2   : > { %2318 = vmatpush1.msra.mxu1 %v2284_v37  ;;  %v2209_v27 = vadd.f32 %v4402_v45, %v2021_v61  ;;  %v2276_v37 = vmax.f32 %v2248_v20, 0.0  ;;  %v1662_v0 = vadd.f32 %v4404_v8, %v4403_v13  ;;  %v2275_v57 = vmax.f32 %v2247_v40, 0.0  ;;  %v4409_v4 = vld [vmem:[#allocation13_spill] sm:$0xff]  ;;  %v4411_v40 = vld [vmem:[#allocation14_spill] sm:$0xff] }
 0x1d3   : > { %v4214_v41 = vpop.f32.mrf.mxu1  ;;  %v4216_v10 = vpop.f32.mrf.mxu0  ;;  %2319 = vmatprep.subr.mxu1 %v4401_v7  ;;  %v2245_v50 = vadd.f32 %v4180_v2, %v2210_v42  ;;  %v2208_v48 = vadd.f32 %v4405_v12, %v2020_v5 }
 0x1d4   : > { %2320 = vmatpush1.msra.mxu1 %v2283_v36  ;;  %v1846_v33 = vadd.f32 %v4406_v17, %v1662_v0  ;;  %v2244_v23 = vadd.f32 %v4180_v2, %v2209_v27 }
 0x1d5   : > { %v4223_v62 = vpop.f32.mrf.mxu0  ;;  %2321 = vmatprep.subr.mxu1 %v4401_v7  ;;  %v3067_v16 = vpop.f32.mrf.mxu1  ;;  %v2273_v39 = vmax.f32 %v2245_v50, 0.0  ;;  %v2243_v54 = vadd.f32 %v4180_v2, %v2208_v48 }
 0x1d6   : > { %2322 = vmatpush1.msra.mxu1 %v2282_v47  ;;  %v2274_v47 = vmax.f32 %v2246_v44, 0.0  ;;  %v2046_v19 = vadd.f32 %v3067_v16, %v4407_v30  ;;  %v2272_v35 = vmax.f32 %v2244_v23, 0.0  ;;  %v2383_v30 = vld [vmem:[%s4378_s4] sm:$0xff] }
 0x1d7   : > { %v4230_v15 = vpop.f32.mrf.mxu0  ;;  %2323 = vmatprep.subr.mxu1 %v4401_v7  ;;  %v2005_v24 = vpop.f32.mrf.mxu1  ;;  %v2271_v16 = vmax.f32 %v2243_v54, 0.0 }
 0x1d8   : > { %2324 = vmatpush1.msra.mxu1 %v2281_v18  ;;  %v2044_v3 = vadd.f32 %v2005_v24, %v4408_v29 }
 0x1d9   : > { %v4237_v22 = vpop.f32.mrf.mxu0  ;;  %2325 = vmatprep.subr.mxu1 %v4401_v7  ;;  %v3068_v59 = vpop.f32.mrf.mxu1 }
 0x1da   : > { %2326 = vmatpush1.msra.mxu1 %v2280_v60  ;;  %v2047_v36 = vadd.f32 %v3068_v59, %v1848_v46 }
 0x1db   : > { %v3097_v11 = vpop.f32.mrf.mxu0  ;;  %2327 = vmatprep.subr.mxu1 %v4401_v7  ;;  %v2008_v25 = vpop.f32.mrf.mxu1 }
 0x1dc   : > { %2328 = vmatpush1.msra.mxu1 %v2279_v56  ;;  %v2045_v52 = vadd.f32 %v2008_v25, %v1846_v33  ;;  %v2234_v60 = vadd.f32 %v3097_v11, %v2046_v19  ;;  %v4410_v11 = vld [vmem:[#allocation11_spill] sm:$0xff]  ;;  %v4417_v19 = vld [vmem:[#allocation6_spill] sm:$0xff] }
 0x1dd   : > { %v2193_v58 = vpop.f32.mrf.mxu0  ;;  %2329 = vmatprep.subr.mxu1 %v4401_v7  ;;  %v2042_v61 = vadd.f32 %v4193_v21, %v4410_v11  ;;  %v4412_v21 = vld [vmem:[#allocation12_spill] sm:$0xff] }
 0x1de   : > { %2330 = vmatpush1.msra.mxu1 %v2278_v55  ;;  %v2043_v55 = vadd.f32 %v4206_v43, %v4409_v4  ;;  %v2269_v20 = vadd.f32 %v4180_v2, %v2234_v60  ;;  %v2232_v32 = vadd.f32 %v2193_v58, %v2044_v3  ;;  %v2041_v43 = vadd.f32 %v4214_v41, %v4411_v40  ;;  %v4413_v41 = vld [vmem:[#allocation9_spill] sm:$0xff] }
 0x1df   : > { %2331 = vmatprep.subr.mxu1 %v4401_v7  ;;  %v3098_v6 = vpop.f32.mrf.mxu0  ;;  %v2230_v5 = vadd.f32 %v4216_v10, %v2042_v61  ;;  %v2039_v10 = vadd.f32 %v4183_v38, %v4413_v41  ;;  %v4415_v38 = vld [vmem:[#allocation10_spill] sm:$0xff] }
 0x1e0   : > { %2332 = vmatpush1.msra.mxu1 %v2277_v26  ;;  %v2235_v18 = vadd.f32 %v3098_v6, %v2047_v36  ;;  %v2231_v24 = vadd.f32 %v4230_v15, %v2043_v55  ;;  %v2297_v58 = vmax.f32 %v2269_v20, 0.0  ;;  %v2267_v59 = vadd.f32 %v4180_v2, %v2232_v32 }
 0x1e1   : > { %2333 = vmatprep.subr.mxu1 %v4401_v7  ;;  %v2196_v49 = vpop.f32.mrf.mxu0  ;;  %v2040_v15 = vadd.f32 %v4199_v51, %v4412_v21  ;;  %v2229_v44 = vadd.f32 %v4237_v22, %v2041_v43  ;;  %v2265_v27 = vadd.f32 %v4180_v2, %v2230_v5  ;;  %v4414_v51 = vld [vmem:[#allocation7_spill] sm:$0xff]  ;;  %v2227_v22 = vadd.f32 %v4201_v14, %v2039_v10 }
 0x1e2   : > { %2334 = vmatpush1.msra.mxu1 %v2276_v37  ;;  %v2270_v56 = vadd.f32 %v4180_v2, %v2235_v18  ;;  %v2233_v31 = vadd.f32 %v2196_v49, %v2045_v52  ;;  %v2266_v46 = vadd.f32 %v4180_v2, %v2231_v24  ;;  %v2295_v13 = vmax.f32 %v2267_v59, 0.0  ;;  %v2384_v49 = vld [vmem:[%s4379_s5] sm:$0x1] }
 0x1e3   : > { %2335 = vmatprep.subr.mxu1 %v4401_v7  ;;  %v2228_v37 = vadd.f32 %v4223_v62, %v2040_v15  ;;  %v2038_v8 = vadd.f32 %v4171_v1, %v4414_v51  ;;  %v2264_v6 = vadd.f32 %v4180_v2, %v2229_v44  ;;  %v2037_v50 = vadd.f32 %v4187_v63, %v4415_v38  ;;  %v4416_v1 = vld [vmem:[#allocation8_spill] sm:$0xff] }
 0x1e4   : > { %2336 = vmatpush1.msra.mxu1 %v2275_v57  ;;  %v2298_v42 = vmax.f32 %v2270_v56, 0.0  ;;  %v2268_v26 = vadd.f32 %v4180_v2, %v2233_v31  ;;  %v2294_v0 = vmax.f32 %v2266_v46, 0.0  ;;  %v2293_v12 = vmax.f32 %v2265_v27, 0.0 }
 0x1e5   : > { %2337 = vmatprep.subr.mxu1 %v4401_v7  ;;  %v2226_v62 = vadd.f32 %v4189_v9, %v2038_v8  ;;  %v2263_v48 = vadd.f32 %v4180_v2, %v2228_v37  ;;  %v2036_v14 = vadd.f32 %v4175_v28, %v4416_v1  ;;  %v2262_v57 = vadd.f32 %v4180_v2, %v2227_v22 }
 0x1e6   : > { %2338 = vmatpush1.msra.mxu1 %v2274_v47  ;;  %v2296_v45 = vmax.f32 %v2268_v26, 0.0  ;;  %v2225_v36 = vadd.f32 %v4208_v53, %v2037_v50  ;;  %v2292_v17 = vmax.f32 %v2264_v6, 0.0 }
 0x1e7   : > { %2339 = vmatprep.subr.mxu1 %v4401_v7  ;;  %v2261_v63 = vadd.f32 %v4180_v2, %v2226_v62  ;;  %v2224_v9 = vadd.f32 %v4195_v34, %v2036_v14  ;;  %v2291_v33 = vmax.f32 %v2263_v48, 0.0  ;;  %v2290_v25 = vmax.f32 %v2262_v57, 0.0 }
 0x1e8   : > { %2340 = vmatpush1.msra.mxu1 %v2273_v39  ;;  %v2260_v47 = vadd.f32 %v4180_v2, %v2225_v36 }
 0x1e9   : > { %2341 = vmatprep.subr.mxu1 %v4401_v7  ;;  %v2289_v28 = vmax.f32 %v2261_v63, 0.0  ;;  %v2259_v53 = vadd.f32 %v4180_v2, %v2224_v9 }
 0x1ea   : > { %2342 = vmatpush1.msra.mxu1 %v2272_v35  ;;  %v2288_v23 = vmax.f32 %v2260_v47, 0.0 }
 0x1eb   : > { %2343 = vmatprep.subr.mxu1 %v4401_v7  ;;  %v2287_v34 = vmax.f32 %v2259_v53, 0.0 }
 0x1ec   : > { %2344 = vmatpush1.msra.mxu1 %v2271_v16 }
 0x1ed   : > { %2353 = vmatprep.subr.mxu1 %v4401_v7 }
 0x1ee   : > { %2354 = vmatpush2.msra.mxu1 %v2298_v42 }
 0x1ef   : > { %2355 = vmatprep.subr.mxu1 %v4401_v7 }
 0x1f0   : > { %2356 = vmatpush2.msra.mxu1 %v2297_v58 }
 0x1f1   : > { %2357 = vmatprep.subr.mxu1 %v4401_v7 }
 0x1f2   : > { %2358 = vmatpush2.msra.mxu1 %v2296_v45 }
 0x1f3   : > { %2359 = vmatprep.subr.mxu1 %v4401_v7 }
 0x1f4   : > { %2360 = vmatpush2.msra.mxu1 %v2295_v13 }
 0x1f5   : > { %2361 = vmatprep.subr.mxu1 %v4401_v7 }
 0x1f6   : > { %2362 = vmatpush2.msra.mxu1 %v2294_v0 }
 0x1f7   : > { %2363 = vmatprep.subr.mxu1 %v4401_v7 }
 0x1f8   : > { %2364 = vmatpush2.msra.mxu1 %v2293_v12 }
 0x1f9   : > { %2365 = vmatprep.subr.mxu1 %v4401_v7 }
 0x1fa   : > { %2366 = vmatpush2.msra.mxu1 %v2292_v17 }
 0x1fb   : > { %2367 = vmatprep.subr.mxu1 %v4401_v7 }
 0x1fc   : > { %2368 = vmatpush2.msra.mxu1 %v2291_v33 }
 0x1fd   : > { %2369 = vmatprep.subr.mxu1 %v4401_v7 }
 0x1fe   : > { %2370 = vmatpush2.msra.mxu1 %v2290_v25 }
 0x1ff   : > { %2371 = vmatprep.subr.mxu1 %v4401_v7 }
 0x200   : > { %2372 = vmatpush2.msra.mxu1 %v2289_v28 }
 0x201   : > { %2373 = vmatprep.subr.mxu1 %v4401_v7 }
 0x202   : > { %2374 = vmatpush2.msra.mxu1 %v2288_v23 }
 0x203   : > { %2375 = vmatprep.subr.mxu1 %v4401_v7 }
 0x204   : > { %2376 = vmatpush2.msra.mxu1 %v2287_v34 }
 0x205   : > { %2378 = vmatmul.mubr.f32.vlgmr.msra.gmra.mxu1 %v4417_v19  ;;  %3099 = vmatprep.subr.mxu1 %v4401_v7 }
 0x206   : > { %3100 = vmatpush3.msra.mxu1 %v2383_v30  ;;  %3101 = vmatprep.mubr.msk.f32.mxu1 %vm3240_vm5, %v4401_v7 }
 0x2c5   : > { %v2379_v2 = vpop.f32.mrf.mxu1 }
 0x2c6   : > { %3102 = vmatmul.mubr.msk.f32.vlgmr.msra.gmra.mxu1 %vm2385_vm6, %v2379_v2 }
 0x2c7   : > { %v2381_v18 = vpop.f32.mrf.mxu1 }
 0x386   : > { %v2455_v39 = vpop.f32.mrf.mxu1 }
 0x387   : > { %v2456_v54 = vadd.f32 %v2455_v39, %v2384_v49 }
 0x388   : > { %v3103_v7 = vpop.f32.mrf.mxu1 }
 0x389   : > { %2459 = vst [vmem:[%s243_s12] sm:$0x1] %v2456_v54 }
 0x38a   : > { %3190 = shalt.err (!%p3187_p3)
}
 0x38b   : > { %s3191_s26 = scalar_lea.hbm %s4339_s16, 16  ;;  %s3195_s9 = scalar_lea.hbm %s4380_s6, 32 }
 0x38c   : > { %p3192_p4 = scmp.ne.s32.totalorder %s4339_s16, %s3191_s26  ;;  %p3196_p9 = scmp.lt.s32.totalorder %s4339_s16, %s4380_s6 }
 0x38d   : > { %p3197_p10 = scmp.lt.s32.totalorder %s3195_s9, %s3191_s26 }
 0x38e   : > { %p3193_p7 = pnand %p3192_p4, %p3315_p5 }
 0x38f   : > { %p3198_p11 = por %p3197_p10, %p3196_p9 }
 0x390   : > { %p3194_p8 = pneg %p3193_p7 }
 0x392   : > { %p3199_p12 = pnand %p3198_p11, %p3194_p8 }
 0x394   : > { %3202 = shalt.err (!%p3199_p12)
}
 0x395   : > { %3117 = dma.vmem_to_hbm [thread:$0]  (%p3315_p5), %s2474_s13, 16, %s4339_s16, %s2461_s17  }
 0x396 PF: > { %p3123_p13 = scmp.ge.s32.totalorder %s3237_s24, 2  ;;  %s2485_s12 = sand.u32 1, %s3225_s21  }
 0x397   : > { %s2486_s14 = scalar_lea.sflag [#allocation3], %s2485_s12 }
 0x398   : > { %p3120_p0 = pnand %p3123_p13, %p3319_p6 }
 0x39a   : > { %p3121_p1 = pneg %p3120_p0 }
 0x39c   : > { %3220 = dma.done.wait (%p3121_p1), %s2486_s14, 16  }
 0x39d   : > { %3222 = vsyncadd (%p3121_p1), %s2486_s14, 4294967280  ;;  %p16_p2 = scmp.ge.s32.totalorder %s3302_s27, 4   ;;  %s4418_s21 = smov %s3229_s22 }
 0x39e   : > { %s4419_s22 = smov %s3233_s23  ;;  %s4420_s23 = smov %s3313_s30 }
 0x39f   : > { %s4421_s24 = smov %s3302_s27  ;;  %18 = sbr.rel (!%p16_p2) target bundleno = 3 (0x3), region = 87 }
 0x3a4   :  { %2490 = vsyncpa [#allocation3], 1 }
 0x3a5   :  { %2492 = vsyncpa [#allocation3 + $0x1], 1 }

</bundles_post_ra>
